<compile_context>
chip_gen: v6e
topology: v6e:2x2x1
jax: 0.10.0
libtpu: 0.0.40
codegen_flags: <defaults>
</compile_context>

<pallas_src>
import functools

import jax
import jax.numpy as jnp
from jax.experimental import pallas as pl
from jax.experimental.pallas import tpu as pltpu

BN_EPS = 1e-5


# --------------------------------------------------------------------------
# Pallas kernels
# --------------------------------------------------------------------------
def _deconv_block_kernel(x_ref, w_ref, y_ref, st_ref, *, R, W, Cin):
    """One row block (R folded output rows) of the transposed conv.

    x_ref  : (1, R+2, W+2, Cin) bf16  pre-haloed, zero-padded input row block
    w_ref  : (9, Cin, 4*Cout)   bf16  folded weights, tap index = dy*3 + dx
    y_ref  : (1, R*W, 4*Cout)   bf16  pre-BN folded conv output block
    st_ref : (1, 2, 4*Cout)     f32   per-block partial [sum; sumsq] (from f32 acc)
    """
    C4 = w_ref.shape[2]
    rows = x_ref[0]                                    # (R+2, W+2, Cin) bf16

    # 9 accumulated MXU matmuls with M = R*W (128-256), K = Cin, N = 4*Cout.
    # dx slices the sublane (W) axis once per dx; dy slices a major dim (cheap).
    acc = jnp.zeros((R * W, C4), jnp.float32)
    for dx in range(3):
        xs = rows[:, dx:dx + W, :]                     # (R+2, W, Cin)
        for dy in range(3):
            lhs = xs[dy:dy + R].reshape(R * W, Cin)    # (R*W, Cin) bf16
            acc += jnp.dot(lhs, w_ref[dy * 3 + dx],
                           preferred_element_type=jnp.float32)

    # bf16 intermediate (stats below still come from the exact f32 accumulator).
    y_ref[...] = acc.astype(jnp.bfloat16).reshape(1, R * W, C4)

    # BN partial statistics for this block.
    s = jnp.sum(acc, axis=0, keepdims=True)            # (1, 4*Cout)
    ss = jnp.sum(acc * acc, axis=0, keepdims=True)
    st_ref[...] = jnp.concatenate([s, ss], axis=0).reshape(1, 2, C4)


def _bn_relu_kernel(y_ref, ss_ref, o_ref):
    """Lane-dense BN apply + ReLU: o = relu(y*scale + shift).

    y_ref : (Tr, 4*Cout) bf16    ss_ref : (2, 4*Cout) f32 [scale; shift]
    o_ref : (Tr, 4*Cout) f32
    """
    y = y_ref[...].astype(jnp.float32)
    o_ref[...] = jnp.maximum(y * ss_ref[0:1, :] + ss_ref[1:2, :], 0.0)


# --------------------------------------------------------------------------
# Host-side layout glue
# --------------------------------------------------------------------------
def fold_deconv_weight(wt):
    """(Cin, Cout, 4, 4) PyTorch ConvTranspose weight -> (9, Cin, 4*Cout).

    ConvTranspose2d(k=4, s=2, p=1): output pixel (2i+py, 2j+px) only touches
    input pixels at offsets {-1,0,+1}; for each (parity, shift) there is
    exactly one kernel tap.  The folded weight realizes the deconv as a 3x3
    'same' conv whose lane axis is [parity(2x2) x Cout]; tap index = dy*3+dx.
    """
    Cin, Cout = wt.shape[0], wt.shape[1]
    wf = jnp.zeros((3, 3, Cin, 4 * Cout), wt.dtype)
    # (parity, input-shift) -> transposed-conv kernel index (oy = 2*iy - 1 + k)
    taps = {(0, -1): 3, (0, 0): 1, (1, 0): 2, (1, 1): 0}
    for (py, sy), ky in taps.items():
        for (px, sx), kx in taps.items():
            p = 2 * py + px
            wf = wf.at[sy + 1, sx + 1, :, p * Cout:(p + 1) * Cout].set(
                wt[:, :, ky, kx])
    return wf.reshape(9, Cin, 4 * Cout)


def _pick_tile(m, candidates):
    # Never falls back to the full dimension (VMEM-safe on v7x's 64 MiB).
    for c in candidates:
        if m % c == 0:
            return c
    return 1


def _pick_row_block(H, W):
    """Rows per pass-1 block: prefer M = R*W in the 128-256+ range while
    keeping >= 2 row blocks (pipelining depth / v7x megacore)."""
    for r in (16, 8, 4, 2):
        if H % r == 0 and H // r >= 2 and r * W <= 4096:
            return r
    for r in (16, 8, 4, 2):
        if H % r == 0:
            return r
    return 1


# --------------------------------------------------------------------------
# Forward pass
# --------------------------------------------------------------------------
def deconv_bn_relu(x_nchw, wt, gamma, beta, eps=BN_EPS):
    """ConvTranspose2d(4, s=2, p=1, bias=False) + BatchNorm2d(train) + ReLU."""
    x = jnp.transpose(x_nchw, (0, 2, 3, 1)).astype(jnp.float32)   # NHWC
    B, H, W, Cin = x.shape
    Cout = wt.shape[1]
    C4 = 4 * Cout

    R = _pick_row_block(H, W)
    nb = H // R
    T = B * nb

    # bf16 operands for the MXU; zero-pad spatially by 1 for the 3x3 form and
    # gather pre-haloed row blocks (R+2 rows each) so pass 1 needs ONE input
    # DMA per grid step (1.25x duplication instead of the previous 3x).
    xp = jnp.pad(x, ((0, 0), (1, 1), (1, 1), (0, 0))).astype(jnp.bfloat16)
    row_idx = jnp.arange(nb)[:, None] * R + jnp.arange(R + 2)[None, :]
    xb = xp[:, row_idx].reshape(T, R + 2, W + 2, Cin)             # (T,R+2,W+2,Cin)

    wf9 = fold_deconv_weight(wt).astype(jnp.bfloat16)             # (9,Cin,C4)

    # ---- pass 1: row-blocked deconv (9 accumulated MXU matmuls / block) -----
    y_blocks, partials = pl.pallas_call(
        functools.partial(_deconv_block_kernel, R=R, W=W, Cin=Cin),
        grid=(T,),
        in_specs=[
            pl.BlockSpec((1, R + 2, W + 2, Cin), lambda t: (t, 0, 0, 0)),
            pl.BlockSpec((9, Cin, C4), lambda t: (0, 0, 0)),
        ],
        out_specs=(
            pl.BlockSpec((1, R * W, C4), lambda t: (t, 0, 0)),
            pl.BlockSpec((1, 2, C4), lambda t: (t, 0, 0)),
        ),
        out_shape=(
            jax.ShapeDtypeStruct((T, R * W, C4), jnp.bfloat16),
            jax.ShapeDtypeStruct((T, 2, C4), jnp.float32),
        ),
        compiler_params=pltpu.CompilerParams(
            dimension_semantics=("parallel",)),
    )(xb, wf9)

    # ---- BN statistics: tiny (T, 2, C4) partials, reduced with plain jnp ----
    sums = jnp.sum(partials, axis=0)                              # (2, C4)
    s_c = jnp.sum(sums[0].reshape(4, Cout), axis=0)               # fold parities
    ss_c = jnp.sum(sums[1].reshape(4, Cout), axis=0)
    count = float(B * (2 * H) * (2 * W))                          # elems / channel
    mean = s_c / count
    # NOTE: E[x^2]-E[x]^2 in f32; clamp guards against tiny negative variances.
    var = jnp.maximum(ss_c / count - mean * mean, 0.0)
    scale_c = gamma.astype(jnp.float32) * jax.lax.rsqrt(var + eps)
    shift_c = beta.astype(jnp.float32) - mean * scale_c
    scaleshift = jnp.stack(
        [jnp.tile(scale_c, 4), jnp.tile(shift_c, 4)], axis=0)     # (2, C4)

    # ---- pass 3: BN apply + ReLU on large lane-dense (Tr, 4*Cout) tiles ------
    M = B * H * W
    yf = y_blocks.reshape(M, C4)
    Tr = _pick_tile(M, (2048, 1024, 512, 256, 128, 64, 32, 16, 8, 4, 2, 1))
    out_folded = pl.pallas_call(
        _bn_relu_kernel,
        grid=(M // Tr,),
        in_specs=[
            pl.BlockSpec((Tr, C4), lambda t: (t, 0)),
            pl.BlockSpec((2, C4), lambda t: (0, 0)),
        ],
        out_specs=pl.BlockSpec((Tr, C4), lambda t: (t, 0)),
        out_shape=jax.ShapeDtypeStruct((M, C4), jnp.float32),
        compiler_params=pltpu.CompilerParams(
            dimension_semantics=("parallel",)),
    )(yf, scaleshift)

    # depth-to-space: interleave the 4 parities back to 2x spatial resolution.
    # (left to XLA as a single fused transpose; fusing into pass 3 would force
    #  lane-sparse 32-wide stores for Cout=32.)
    out = out_folded.reshape(B, H, W, 2, 2, Cout)
    out = out.transpose(0, 1, 3, 2, 4, 5).reshape(B, 2 * H, 2 * W, Cout)
    return jnp.transpose(out, (0, 3, 1, 2))                       # NCHW f32


# --------------------------------------------------------------------------
# Pure-JAX reference (independent of the parity decomposition)
# --------------------------------------------------------------------------
def deconv_bn_relu_ref(x_nchw, wt, gamma, beta, eps=BN_EPS):
    x = jnp.transpose(x_nchw, (0, 2, 3, 1)).astype(jnp.float32)
    B, H, W, Cin = x.shape
    Cout = wt.shape[1]
    full = jnp.zeros((B, 2 * H + 2, 2 * W + 2, Cout), jnp.float32)
    for ky in range(4):
        for kx in range(4):
            contrib = jnp.einsum("bhwc,cd->bhwd", x, wt[:, :, ky, kx])
            full = full.at[:, ky:ky + 2 * H:2, kx:kx + 2 * W:2, :].add(contrib)
    y = full[:, 1:1 + 2 * H, 1:1 + 2 * W, :]
    mean = jnp.mean(y, axis=(0, 1, 2))
    var = jnp.mean((y - mean) ** 2, axis=(0, 1, 2))
    y = (y - mean) * jax.lax.rsqrt(var + eps) * gamma + beta
    y = jnp.maximum(y, 0.0)
    return jnp.transpose(y, (0, 3, 1, 2))


# --------------------------------------------------------------------------
if __name__ == "__main__":
    key = jax.random.PRNGKey(0)
    kx, kw, kg, kb = jax.random.split(key, 4)

    B, Cin, H, W = 2, 64, 16, 16
    Cout = 32                                  # 4*Cout = 128 -> lane-dense

    x = jax.random.normal(kx, (B, Cin, H, W), jnp.float32)
    wt = jax.random.normal(kw, (Cin, Cout, 4, 4), jnp.float32) / jnp.sqrt(
        jnp.float32(Cin * 16))
    gamma = 1.0 + 0.1 * jax.random.normal(kg, (Cout,), jnp.float32)
    beta = 0.05 * jax.random.normal(kb, (Cout,), jnp.float32)

    fwd = jax.jit(deconv_bn_relu)
    out = jax.block_until_ready(fwd(x, wt, gamma, beta))

    assert out.shape == (B, Cout, 2 * H, 2 * W), out.shape
    assert bool(jnp.all(jnp.isfinite(out)))

    ref = deconv_bn_relu_ref(x, wt, gamma, beta)
    err = float(jnp.max(jnp.abs(out - ref)))
    assert err < 5e-2, f"max abs error vs reference: {err}"

    print("KERNEL_OK")
</pallas_src>

<mosaic_0001>
module attributes {stable_mosaic.version = 11 : i64} {
  func.func @_deconv_block_kernel(%arg0: i32, %arg1: memref<1x10x18x64xbf16, #tpu.memory_space<vmem>>, %arg2: memref<9x64x128xbf16, #tpu.memory_space<vmem>>, %arg3: memref<1x128x128xbf16, #tpu.memory_space<vmem>>, %arg4: memref<1x2x128xf32, #tpu.memory_space<vmem>>) attributes {dimension_semantics = [#tpu.dimension_semantics<parallel>], iteration_bounds = array<i64: 4>, scalar_prefetch = 0 : i64, scratch_operands = 0 : i64, tpu.core_type = #tpu.core_type<tc>, window_params = [{transform_indices = @transform_0, window_bounds = array<i64: 1, 10, 18, 64>}, {pipeline_mode = #tpu.pipeline_mode<synchronous>, transform_indices = @transform_1, window_bounds = array<i64: 9, 64, 128>}, {transform_indices = @transform_2, window_bounds = array<i64: 1, 128, 128>}, {transform_indices = @transform_3, window_bounds = array<i64: 1, 2, 128>}]} {
    %c0 = arith.constant 0 : index
    %c0_0 = arith.constant 0 : index
    %c0_1 = arith.constant 0 : index
    %c0_2 = arith.constant 0 : index
    %0 = vector.load %arg1[%c0, %c0_0, %c0_1, %c0_2] : memref<1x10x18x64xbf16, #tpu.memory_space<vmem>>, vector<1x10x18x64xbf16>
    %1 = vector.shape_cast %0 : vector<1x10x18x64xbf16> to vector<10x18x64xbf16>
    %cst = arith.constant 0.000000e+00 : f32
    %2 = vector.broadcast %cst : f32 to vector<128x128xf32>
    %3 = vector.extract_strided_slice %1 {offsets = [0, 0, 0], sizes = [10, 16, 64], strides = [1, 1, 1]} : vector<10x18x64xbf16> to vector<10x16x64xbf16>
    %4 = vector.extract_strided_slice %3 {offsets = [0, 0, 0], sizes = [8, 16, 64], strides = [1, 1, 1]} : vector<10x16x64xbf16> to vector<8x16x64xbf16>
    %5 = vector.shape_cast %4 : vector<8x16x64xbf16> to vector<128x64xbf16>
    %c0_3 = arith.constant 0 : index
    %c0_4 = arith.constant 0 : index
    %c0_5 = arith.constant 0 : index
    %6 = vector.load %arg2[%c0_3, %c0_4, %c0_5] : memref<9x64x128xbf16, #tpu.memory_space<vmem>>, vector<1x64x128xbf16>
    %7 = vector.shape_cast %6 : vector<1x64x128xbf16> to vector<64x128xbf16>
    %cst_6 = arith.constant dense<0.000000e+00> : vector<128x128xf32>
    %8 = tpu.matmul %5, %7, %cst_6 {dimension_numbers = #tpu.dot_dimension_numbers<[1], [0], [0], [1], [0, 0, 1, 1], [], []>} : vector<128x64xbf16>, vector<64x128xbf16>, vector<128x128xf32> -> vector<128x128xf32>
    %9 = arith.addf %2, %8 : vector<128x128xf32>
    %10 = vector.extract_strided_slice %3 {offsets = [1, 0, 0], sizes = [8, 16, 64], strides = [1, 1, 1]} : vector<10x16x64xbf16> to vector<8x16x64xbf16>
    %11 = vector.shape_cast %10 : vector<8x16x64xbf16> to vector<128x64xbf16>
    %c3 = arith.constant 3 : index
    %c0_7 = arith.constant 0 : index
    %c0_8 = arith.constant 0 : index
    %12 = vector.load %arg2[%c3, %c0_7, %c0_8] : memref<9x64x128xbf16, #tpu.memory_space<vmem>>, vector<1x64x128xbf16>
    %13 = vector.shape_cast %12 : vector<1x64x128xbf16> to vector<64x128xbf16>
    %cst_9 = arith.constant dense<0.000000e+00> : vector<128x128xf32>
    %14 = tpu.matmul %11, %13, %cst_9 {dimension_numbers = #tpu.dot_dimension_numbers<[1], [0], [0], [1], [0, 0, 1, 1], [], []>} : vector<128x64xbf16>, vector<64x128xbf16>, vector<128x128xf32> -> vector<128x128xf32>
    %15 = arith.addf %9, %14 : vector<128x128xf32>
    %16 = vector.extract_strided_slice %3 {offsets = [2, 0, 0], sizes = [8, 16, 64], strides = [1, 1, 1]} : vector<10x16x64xbf16> to vector<8x16x64xbf16>
    %17 = vector.shape_cast %16 : vector<8x16x64xbf16> to vector<128x64xbf16>
    %c6 = arith.constant 6 : index
    %c0_10 = arith.constant 0 : index
    %c0_11 = arith.constant 0 : index
    %18 = vector.load %arg2[%c6, %c0_10, %c0_11] : memref<9x64x128xbf16, #tpu.memory_space<vmem>>, vector<1x64x128xbf16>
    %19 = vector.shape_cast %18 : vector<1x64x128xbf16> to vector<64x128xbf16>
    %cst_12 = arith.constant dense<0.000000e+00> : vector<128x128xf32>
    %20 = tpu.matmul %17, %19, %cst_12 {dimension_numbers = #tpu.dot_dimension_numbers<[1], [0], [0], [1], [0, 0, 1, 1], [], []>} : vector<128x64xbf16>, vector<64x128xbf16>, vector<128x128xf32> -> vector<128x128xf32>
    %21 = arith.addf %15, %20 : vector<128x128xf32>
    %22 = vector.extract_strided_slice %1 {offsets = [0, 1, 0], sizes = [10, 16, 64], strides = [1, 1, 1]} : vector<10x18x64xbf16> to vector<10x16x64xbf16>
    %23 = vector.extract_strided_slice %22 {offsets = [0, 0, 0], sizes = [8, 16, 64], strides = [1, 1, 1]} : vector<10x16x64xbf16> to vector<8x16x64xbf16>
    %24 = vector.shape_cast %23 : vector<8x16x64xbf16> to vector<128x64xbf16>
    %c1 = arith.constant 1 : index
    %c0_13 = arith.constant 0 : index
    %c0_14 = arith.constant 0 : index
    %25 = vector.load %arg2[%c1, %c0_13, %c0_14] : memref<9x64x128xbf16, #tpu.memory_space<vmem>>, vector<1x64x128xbf16>
    %26 = vector.shape_cast %25 : vector<1x64x128xbf16> to vector<64x128xbf16>
    %cst_15 = arith.constant dense<0.000000e+00> : vector<128x128xf32>
    %27 = tpu.matmul %24, %26, %cst_15 {dimension_numbers = #tpu.dot_dimension_numbers<[1], [0], [0], [1], [0, 0, 1, 1], [], []>} : vector<128x64xbf16>, vector<64x128xbf16>, vector<128x128xf32> -> vector<128x128xf32>
    %28 = arith.addf %21, %27 : vector<128x128xf32>
    %29 = vector.extract_strided_slice %22 {offsets = [1, 0, 0], sizes = [8, 16, 64], strides = [1, 1, 1]} : vector<10x16x64xbf16> to vector<8x16x64xbf16>
    %30 = vector.shape_cast %29 : vector<8x16x64xbf16> to vector<128x64xbf16>
    %c4 = arith.constant 4 : index
    %c0_16 = arith.constant 0 : index
    %c0_17 = arith.constant 0 : index
    %31 = vector.load %arg2[%c4, %c0_16, %c0_17] : memref<9x64x128xbf16, #tpu.memory_space<vmem>>, vector<1x64x128xbf16>
    %32 = vector.shape_cast %31 : vector<1x64x128xbf16> to vector<64x128xbf16>
    %cst_18 = arith.constant dense<0.000000e+00> : vector<128x128xf32>
    %33 = tpu.matmul %30, %32, %cst_18 {dimension_numbers = #tpu.dot_dimension_numbers<[1], [0], [0], [1], [0, 0, 1, 1], [], []>} : vector<128x64xbf16>, vector<64x128xbf16>, vector<128x128xf32> -> vector<128x128xf32>
    %34 = arith.addf %28, %33 : vector<128x128xf32>
    %35 = vector.extract_strided_slice %22 {offsets = [2, 0, 0], sizes = [8, 16, 64], strides = [1, 1, 1]} : vector<10x16x64xbf16> to vector<8x16x64xbf16>
    %36 = vector.shape_cast %35 : vector<8x16x64xbf16> to vector<128x64xbf16>
    %c7 = arith.constant 7 : index
    %c0_19 = arith.constant 0 : index
    %c0_20 = arith.constant 0 : index
    %37 = vector.load %arg2[%c7, %c0_19, %c0_20] : memref<9x64x128xbf16, #tpu.memory_space<vmem>>, vector<1x64x128xbf16>
    %38 = vector.shape_cast %37 : vector<1x64x128xbf16> to vector<64x128xbf16>
    %cst_21 = arith.constant dense<0.000000e+00> : vector<128x128xf32>
    %39 = tpu.matmul %36, %38, %cst_21 {dimension_numbers = #tpu.dot_dimension_numbers<[1], [0], [0], [1], [0, 0, 1, 1], [], []>} : vector<128x64xbf16>, vector<64x128xbf16>, vector<128x128xf32> -> vector<128x128xf32>
    %40 = arith.addf %34, %39 : vector<128x128xf32>
    %41 = vector.extract_strided_slice %1 {offsets = [0, 2, 0], sizes = [10, 16, 64], strides = [1, 1, 1]} : vector<10x18x64xbf16> to vector<10x16x64xbf16>
    %42 = vector.extract_strided_slice %41 {offsets = [0, 0, 0], sizes = [8, 16, 64], strides = [1, 1, 1]} : vector<10x16x64xbf16> to vector<8x16x64xbf16>
    %43 = vector.shape_cast %42 : vector<8x16x64xbf16> to vector<128x64xbf16>
    %c2 = arith.constant 2 : index
    %c0_22 = arith.constant 0 : index
    %c0_23 = arith.constant 0 : index
    %44 = vector.load %arg2[%c2, %c0_22, %c0_23] : memref<9x64x128xbf16, #tpu.memory_space<vmem>>, vector<1x64x128xbf16>
    %45 = vector.shape_cast %44 : vector<1x64x128xbf16> to vector<64x128xbf16>
    %cst_24 = arith.constant dense<0.000000e+00> : vector<128x128xf32>
    %46 = tpu.matmul %43, %45, %cst_24 {dimension_numbers = #tpu.dot_dimension_numbers<[1], [0], [0], [1], [0, 0, 1, 1], [], []>} : vector<128x64xbf16>, vector<64x128xbf16>, vector<128x128xf32> -> vector<128x128xf32>
    %47 = arith.addf %40, %46 : vector<128x128xf32>
    %48 = vector.extract_strided_slice %41 {offsets = [1, 0, 0], sizes = [8, 16, 64], strides = [1, 1, 1]} : vector<10x16x64xbf16> to vector<8x16x64xbf16>
    %49 = vector.shape_cast %48 : vector<8x16x64xbf16> to vector<128x64xbf16>
    %c5 = arith.constant 5 : index
    %c0_25 = arith.constant 0 : index
    %c0_26 = arith.constant 0 : index
    %50 = vector.load %arg2[%c5, %c0_25, %c0_26] : memref<9x64x128xbf16, #tpu.memory_space<vmem>>, vector<1x64x128xbf16>
    %51 = vector.shape_cast %50 : vector<1x64x128xbf16> to vector<64x128xbf16>
    %cst_27 = arith.constant dense<0.000000e+00> : vector<128x128xf32>
    %52 = tpu.matmul %49, %51, %cst_27 {dimension_numbers = #tpu.dot_dimension_numbers<[1], [0], [0], [1], [0, 0, 1, 1], [], []>} : vector<128x64xbf16>, vector<64x128xbf16>, vector<128x128xf32> -> vector<128x128xf32>
    %53 = arith.addf %47, %52 : vector<128x128xf32>
    %54 = vector.extract_strided_slice %41 {offsets = [2, 0, 0], sizes = [8, 16, 64], strides = [1, 1, 1]} : vector<10x16x64xbf16> to vector<8x16x64xbf16>
    %55 = vector.shape_cast %54 : vector<8x16x64xbf16> to vector<128x64xbf16>
    %c8 = arith.constant 8 : index
    %c0_28 = arith.constant 0 : index
    %c0_29 = arith.constant 0 : index
    %56 = vector.load %arg2[%c8, %c0_28, %c0_29] : memref<9x64x128xbf16, #tpu.memory_space<vmem>>, vector<1x64x128xbf16>
    %57 = vector.shape_cast %56 : vector<1x64x128xbf16> to vector<64x128xbf16>
    %cst_30 = arith.constant dense<0.000000e+00> : vector<128x128xf32>
    %58 = tpu.matmul %55, %57, %cst_30 {dimension_numbers = #tpu.dot_dimension_numbers<[1], [0], [0], [1], [0, 0, 1, 1], [], []>} : vector<128x64xbf16>, vector<64x128xbf16>, vector<128x128xf32> -> vector<128x128xf32>
    %59 = arith.addf %53, %58 : vector<128x128xf32>
    %60 = arith.truncf %59 : vector<128x128xf32> to vector<128x128xbf16>
    %61 = vector.shape_cast %60 : vector<128x128xbf16> to vector<1x128x128xbf16>
    %c0_31 = arith.constant 0 : index
    %c0_32 = arith.constant 0 : index
    %c0_33 = arith.constant 0 : index
    %62 = vector.load %arg3[%c0_31, %c0_32, %c0_33] : memref<1x128x128xbf16, #tpu.memory_space<vmem>>, vector<1x128x128xbf16>
    tpu.vector_store %arg3[%c0_31, %c0_32, %c0_33], %61 {strides = array<i32>} : memref<1x128x128xbf16, #tpu.memory_space<vmem>>, vector<1x128x128xbf16>,
    %cst_34 = arith.constant dense<0.000000e+00> : vector<128xf32>
    %63 = vector.multi_reduction <add>, %59, %cst_34 [0] : vector<128x128xf32> to vector<128xf32>
    %64 = vector.shape_cast %63 : vector<128xf32> to vector<1x128xf32>
    %65 = arith.mulf %59, %59 : vector<128x128xf32>
    %cst_35 = arith.constant dense<0.000000e+00> : vector<128xf32>
    %66 = vector.multi_reduction <add>, %65, %cst_35 [0] : vector<128x128xf32> to vector<128xf32>
    %67 = vector.shape_cast %66 : vector<128xf32> to vector<1x128xf32>
    %68 = tpu.concatenate %64, %67 in 0 : vector<1x128xf32>, vector<1x128xf32> -> vector<2x128xf32>
    %69 = vector.shape_cast %68 : vector<2x128xf32> to vector<1x2x128xf32>
    %c0_36 = arith.constant 0 : index
    %c0_37 = arith.constant 0 : index
    %c0_38 = arith.constant 0 : index
    %70 = vector.load %arg4[%c0_36, %c0_37, %c0_38] : memref<1x2x128xf32, #tpu.memory_space<vmem>>, vector<1x2x128xf32>
    tpu.vector_store %arg4[%c0_36, %c0_37, %c0_38], %69 {strides = array<i32>} : memref<1x2x128xf32, #tpu.memory_space<vmem>>, vector<1x2x128xf32>,
    return
  }
  func.func @transform_0(%arg0: i32) -> (i32, i32, i32, i32) {
    %c0_i32 = arith.constant 0 : i32
    %c0_i32_0 = arith.constant 0 : i32
    %c0_i32_1 = arith.constant 0 : i32
    %c0_i32_2 = arith.constant 0 : i32
    return %arg0, %c0_i32, %c0_i32_0, %c0_i32_1 : i32, i32, i32, i32
  }
  func.func @transform_1(%arg0: i32) -> (i32, i32, i32) {
    %c0_i32 = arith.constant 0 : i32
    %c0_i32_0 = arith.constant 0 : i32
    %c0_i32_1 = arith.constant 0 : i32
    %c0_i32_2 = arith.constant 0 : i32
    return %c0_i32, %c0_i32_0, %c0_i32_1 : i32, i32, i32
  }
  func.func @transform_2(%arg0: i32) -> (i32, i32, i32) {
    %c0_i32 = arith.constant 0 : i32
    %c0_i32_0 = arith.constant 0 : i32
    %c0_i32_1 = arith.constant 0 : i32
    return %arg0, %c0_i32, %c0_i32_0 : i32, i32, i32
  }
  func.func @transform_3(%arg0: i32) -> (i32, i32, i32) {
    %c0_i32 = arith.constant 0 : i32
    %c0_i32_0 = arith.constant 0 : i32
    %c0_i32_1 = arith.constant 0 : i32
    return %arg0, %c0_i32, %c0_i32_0 : i32, i32, i32
  }
}

module attributes {stable_mosaic.version = 11 : i64} {
  func.func @_bn_relu_kernel(%arg0: i32, %arg1: memref<512x128xbf16, #tpu.memory_space<vmem>>, %arg2: memref<2x128xf32, #tpu.memory_space<vmem>>, %arg3: memref<512x128xf32, #tpu.memory_space<vmem>>) attributes {dimension_semantics = [#tpu.dimension_semantics<parallel>], iteration_bounds = array<i64: 1>, scalar_prefetch = 0 : i64, scratch_operands = 0 : i64, tpu.core_type = #tpu.core_type<tc>, window_params = [{transform_indices = @transform_0, window_bounds = array<i64: 512, 128>}, {pipeline_mode = #tpu.pipeline_mode<synchronous>, transform_indices = @transform_1, window_bounds = array<i64: 2, 128>}, {transform_indices = @transform_2, window_bounds = array<i64: 512, 128>}]} {
    %c0 = arith.constant 0 : index
    %c0_0 = arith.constant 0 : index
    %0 = vector.load %arg1[%c0, %c0_0] : memref<512x128xbf16, #tpu.memory_space<vmem>>, vector<512x128xbf16>
    %1 = arith.extf %0 : vector<512x128xbf16> to vector<512x128xf32>
    %c0_1 = arith.constant 0 : index
    %c0_2 = arith.constant 0 : index
    %2 = vector.load %arg2[%c0_1, %c0_2] : memref<2x128xf32, #tpu.memory_space<vmem>>, vector<1x128xf32>
    %3 = vector.broadcast %2 : vector<1x128xf32> to vector<512x128xf32>
    %4 = arith.mulf %1, %3 : vector<512x128xf32>
    %c1 = arith.constant 1 : index
    %c0_3 = arith.constant 0 : index
    %5 = vector.load %arg2[%c1, %c0_3] : memref<2x128xf32, #tpu.memory_space<vmem>>, vector<1x128xf32>
    %6 = vector.broadcast %5 : vector<1x128xf32> to vector<512x128xf32>
    %7 = arith.addf %4, %6 : vector<512x128xf32>
    %cst = arith.constant 0.000000e+00 : f32
    %8 = vector.broadcast %cst : f32 to vector<512x128xf32>
    %9 = arith.maximumf %7, %8 : vector<512x128xf32>
    %c0_4 = arith.constant 0 : index
    %c0_5 = arith.constant 0 : index
    %10 = vector.load %arg3[%c0_4, %c0_5] : memref<512x128xf32, #tpu.memory_space<vmem>>, vector<512x128xf32>
    tpu.vector_store %arg3[%c0_4, %c0_5], %9 {strides = array<i32>} : memref<512x128xf32, #tpu.memory_space<vmem>>, vector<512x128xf32>,
    return
  }
  func.func @transform_0(%arg0: i32) -> (i32, i32) {
    %c0_i32 = arith.constant 0 : i32
    %c0_i32_0 = arith.constant 0 : i32
    return %arg0, %c0_i32 : i32, i32
  }
  func.func @transform_1(%arg0: i32) -> (i32, i32) {
    %c0_i32 = arith.constant 0 : i32
    %c0_i32_0 = arith.constant 0 : i32
    %c0_i32_1 = arith.constant 0 : i32
    return %c0_i32, %c0_i32_0 : i32, i32
  }
  func.func @transform_2(%arg0: i32) -> (i32, i32) {
    %c0_i32 = arith.constant 0 : i32
    %c0_i32_0 = arith.constant 0 : i32
    return %arg0, %c0_i32 : i32, i32
  }
}

</mosaic_0001>

<bundles_post_ra>
// kernel: squeeze.34
= control target key start
LH: loop header
LB: loop body
LE: loop exit
PB: predicated region body
PF: predicated region fallthrough
CT: control target
= control target key end

     0   :  { %s40_s8 = smov 32   ;;  %vm8_vm0 = vcmask 261120   ;;  %s41_s9 = smov 64   ;;  %s58_s0 = inlined_call_operand.vmem [shape: f32[128], index: 0, kind: input, shape index: {}]   ;;  %s59_s1 = inlined_call_operand.vmem [shape: f32[4,32], index: 1, kind: output, shape index: {}]  }
   0x1   :  { %v5_v0 = vld [vmem:[%s58_s0] sm:$0x1]  ;;  %s39_s0 = smov 96  }
   0x2   :  { %6 = vst [vmem:[#allocation1] sm:$0x1] %v5_v0 }
   0x9   :  { %v10_v1 = vld [vmem:[#allocation1] sm:$0x1]  }
   0xa   :  { %v22_v2 = vld [vmem:[#allocation1] sm:$0x1]   ;;  %11 = vrot.lane.b32.xlu0 %v10_v1, %s39_s0 }
   0xb   :  { %23 = vrot.lane.b32.xlu1 %v22_v2, %s40_s8  ;;  %v7_v3 = vld [vmem:[#allocation1] sm:$0x1]  }
   0xc   :  { %v16_v4 = vld [vmem:[#allocation1] sm:$0x1]   ;;  %9 = vst.msk [vmem:[#allocation0] sm:$0x1] %vm8_vm0, %v7_v3  }
   0xe   :  { %17 = vrot.lane.b32.xlu0 %v16_v4, %s41_s9 }
  0x7c   :  { %v12_v5 = vpop.permute.xlu0 %11  }
  0x7d   :  { %v24_v6 = vpop.permute.xlu1 %23   ;;  %15 = vst.msk [vmem:[#allocation0 + $0x1] sm:$0x1] %vm8_vm0, %v12_v5  }
  0x7e   :  { %27 = vst.msk [vmem:[#allocation0 + $0x3] sm:$0x1] %vm8_vm0, %v24_v6  }
  0x80   :  { %v18_v7 = vpop.permute.xlu0 %17  }
  0x81   :  { %21 = vst.msk [vmem:[#allocation0 + $0x2] sm:$0x1] %vm8_vm0, %v18_v7  }
  0x88   :  { %v32_v8 = vld [vmem:[#allocation0] sm:$0xf] }
  0x89   :  { %35 = vst [vmem:[%s59_s1] sm:$0xf] %v32_v8 }

// kernel: tile.17
= control target key start
LH: loop header
LB: loop body
LE: loop exit
PB: predicated region body
PF: predicated region fallthrough
CT: control target
= control target key end

     0   :  { %s22_s0 = inlined_call_operand.vmem [shape: f32[32], index: 0, kind: input, shape index: {}]   ;;  %s23_s1 = inlined_call_operand.vmem [shape: f32[4,32], index: 1, kind: output, shape index: {}]  }
   0x1   :  { %v4_v0 = vld [vmem:[%s22_s0] ss:$0 sm:$0xff] }
   0x2   :  { %5 = vst [vmem:[%s23_s1] sm:$0xf] %v4_v0 }

// kernel: tile.19
= control target key start
LH: loop header
LB: loop body
LE: loop exit
PB: predicated region body
PF: predicated region fallthrough
CT: control target
= control target key end

     0   :  { %vm8_vm0 = vcmask 261120   ;;  %s40_s8 = smov 32   ;;  %s41_s9 = smov 64   ;;  %vm14_vm1 = vcmask 1048320   ;;  %vm20_vm2 = vcmask 785920   ;;  %vm26_vm3 = vcmask 523520   ;;  %s58_s0 = inlined_call_operand.vmem [shape: f32[4,32], index: 0, kind: input, shape index: {}]   ;;  %s59_s1 = inlined_call_operand.vmem [shape: f32[1,128], index: 1, kind: output, shape index: {}]  }
   0x1   :  { %v5_v0 = vld [vmem:[%s58_s0] sm:$0xf]  ;;  %s39_s0 = smov 96  }
   0x2   :  { %6 = vst [vmem:[#allocation1] sm:$0xf] %v5_v0 }
   0x9   :  { %v11_v1 = vld [vmem:[#allocation1 + $0x3] sm:$0x1]   ;;  %v23_v2 = vld [vmem:[#allocation1 + $0x1] sm:$0x1]   ;;  %v7_v3 = vld [vmem:[#allocation1] sm:$0x1]  }
   0xa   :  { %12 = vrot.lane.b32.xlu0 %v11_v1, %s39_s0  ;;  %24 = vrot.lane.b32.xlu1 %v23_v2, %s40_s8  ;;  %v17_v4 = vld [vmem:[#allocation1 + $0x2] sm:$0x1]   ;;  %9 = vst.msk [vmem:[#allocation0] sm:$0x1] %vm8_vm0, %v7_v3  }
   0xe   :  { %18 = vrot.lane.b32.xlu0 %v17_v4, %s41_s9 }
  0x7c   :  { %v13_v5 = vpop.permute.xlu0 %12   ;;  %v25_v6 = vpop.permute.xlu1 %24  }
  0x7d   :  { %15 = vst.msk [vmem:[#allocation0] sm:$0x1] %vm14_vm1, %v13_v5  }
  0x80   :  { %v19_v7 = vpop.permute.xlu0 %18  }
  0x81   :  { %21 = vst.msk [vmem:[#allocation0] sm:$0x1] %vm20_vm2, %v19_v7  }
  0x82   :  { %27 = vst.msk [vmem:[#allocation0] sm:$0x1] %vm26_vm3, %v25_v6  }
  0x89   :  { %v32_v8 = vld [vmem:[#allocation0] sm:$0x1] }
  0x8a   :  { %35 = vst [vmem:[%s59_s1] sm:$0x1] %v32_v8 }

// kernel: deconv_bn_relu.3
= control target key start
LH: loop header
LB: loop body
LE: loop exit
PB: predicated region body
PF: predicated region fallthrough
CT: control target
= control target key end

     0   :  { %s1011_s0 = inlined_call_operand.vmem [shape: bf16[512,128], index: 0, kind: input, shape index: {}]   ;;  %s1012_s1 = inlined_call_operand.vmem [shape: f32[2,128], index: 1, kind: input, shape index: {}]   ;;  %s1013_s2 = inlined_call_operand.vmem [shape: f32[512,128], index: 2, kind: output, shape index: {}]  }
   0x1   :  { %v412_v0 = vld [vmem:[%s1011_s0] sm:$0xff]   ;;  %v539_v4 = vld [vmem:[%s1011_s0 + $0x8] sm:$0xff]   ;;  %v540_v5 = vld [vmem:[%s1011_s0 + $0x10] sm:$0xff]  }
   0x2   :  { %v591_v1 = vld [vmem:[%s1012_s1] ss:$0 sm:$0xff]  ;;  %v413_v2 = vunpack.c.l.bf16 %v412_v0  ;;  %v414_v3 = vunpack.c.h.bf16 %v412_v0  ;;  %v541_v6 = vld [vmem:[%s1011_s0 + $0x18] sm:$0xff]   ;;  %v605_v7 = vld [vmem:[%s1012_s1 + $0x1] ss:$0 sm:$0xff]  ;;  %v417_v8 = vunpack.c.l.bf16 %v539_v4  ;;  %v418_v9 = vunpack.c.h.bf16 %v539_v4 }
   0x3   :  { %v421_v10 = vunpack.c.l.bf16 %v540_v5  ;;  %v422_v11 = vunpack.c.h.bf16 %v540_v5  ;;  %v425_v14 = vunpack.c.l.bf16 %v541_v6  ;;  %v426_v15 = vunpack.c.h.bf16 %v541_v6  ;;  %v542_v28 = vld [vmem:[%s1011_s0 + $0x20] sm:$0xff]   ;;  %v543_v33 = vld [vmem:[%s1011_s0 + $0x28] sm:$0xff]   ;;  %v544_v34 = vld [vmem:[%s1011_s0 + $0x30] sm:$0xff]  }
   0x4   :  { %v144_v12 = vmul.f32 %v413_v2, %v591_v1  ;;  %v145_v13 = vmul.f32 %v414_v3, %v591_v1  ;;  %v146_v16 = vmul.f32 %v417_v8, %v591_v1  ;;  %v147_v17 = vmul.f32 %v418_v9, %v591_v1  ;;  %v545_v39 = vld [vmem:[%s1011_s0 + $0x38] sm:$0xff]   ;;  %v546_v0 = vld [vmem:[%s1011_s0 + $0x40] sm:$0xff]   ;;  %v547_v6 = vld [vmem:[%s1011_s0 + $0x48] sm:$0xff]  }
   0x5   :  { %v148_v18 = vmul.f32 %v421_v10, %v591_v1  ;;  %v149_v19 = vmul.f32 %v422_v11, %v591_v1  ;;  %v150_v22 = vmul.f32 %v425_v14, %v591_v1  ;;  %v151_v23 = vmul.f32 %v426_v15, %v591_v1  ;;  %v548_v8 = vld [vmem:[%s1011_s0 + $0x50] sm:$0xff]  }
   0x6   :  { %v213_v20 = vadd.f32 %v605_v7, %v144_v12  ;;  %v214_v21 = vadd.f32 %v605_v7, %v145_v13  ;;  %v215_v24 = vadd.f32 %v605_v7, %v146_v16  ;;  %v216_v25 = vadd.f32 %v605_v7, %v147_v17  ;;  %v549_v13 = vld [vmem:[%s1011_s0 + $0x58] sm:$0xff]  }
   0x7   :  { %v217_v26 = vadd.f32 %v605_v7, %v148_v18  ;;  %v218_v27 = vadd.f32 %v605_v7, %v149_v19  ;;  %v219_v31 = vadd.f32 %v605_v7, %v150_v22  ;;  %v220_v32 = vadd.f32 %v605_v7, %v151_v23 }
   0x8   :  { %v277_v29 = vmax.f32 %v213_v20, 0.0  ;;  %v278_v30 = vmax.f32 %v214_v21, 0.0  ;;  %v279_v35 = vmax.f32 %v215_v24, 0.0  ;;  %v280_v36 = vmax.f32 %v216_v25, 0.0 }
   0x9   :  { %v281_v37 = vmax.f32 %v217_v26, 0.0  ;;  %v282_v38 = vmax.f32 %v218_v27, 0.0  ;;  %v283_v40 = vmax.f32 %v219_v31, 0.0  ;;  %v284_v41 = vmax.f32 %v220_v32, 0.0 }
   0xa   :  { %341 = vst [vmem:[%s1013_s2] sm:$0xff] %v277_v29  ;;  %342 = vst [vmem:[%s1013_s2 + $0x8] sm:$0xff] %v278_v30  ;;  %v429_v42 = vunpack.c.l.bf16 %v542_v28  ;;  %v430_v43 = vunpack.c.h.bf16 %v542_v28  ;;  %v433_v44 = vunpack.c.l.bf16 %v543_v33  ;;  %v434_v45 = vunpack.c.h.bf16 %v543_v33 }
   0xb   :  { %343 = vst [vmem:[%s1013_s2 + $0x10] sm:$0xff] %v279_v35  ;;  %344 = vst [vmem:[%s1013_s2 + $0x18] sm:$0xff] %v280_v36  ;;  %v437_v46 = vunpack.c.l.bf16 %v544_v34  ;;  %v438_v47 = vunpack.c.h.bf16 %v544_v34  ;;  %v441_v50 = vunpack.c.l.bf16 %v545_v39  ;;  %v442_v51 = vunpack.c.h.bf16 %v545_v39 }
   0xc   :  { %345 = vst [vmem:[%s1013_s2 + $0x20] sm:$0xff] %v281_v37  ;;  %346 = vst [vmem:[%s1013_s2 + $0x28] sm:$0xff] %v282_v38  ;;  %v152_v48 = vmul.f32 %v429_v42, %v591_v1  ;;  %v153_v49 = vmul.f32 %v430_v43, %v591_v1  ;;  %v154_v52 = vmul.f32 %v433_v44, %v591_v1  ;;  %v445_v16 = vunpack.c.l.bf16 %v546_v0  ;;  %v550_v38 = vld [vmem:[%s1011_s0 + $0x60] sm:$0xff]   ;;  %v551_v43 = vld [vmem:[%s1011_s0 + $0x68] sm:$0xff]  }
   0xd   :  { %347 = vst [vmem:[%s1013_s2 + $0x30] sm:$0xff] %v283_v40  ;;  %348 = vst [vmem:[%s1013_s2 + $0x38] sm:$0xff] %v284_v41  ;;  %v155_v53 = vmul.f32 %v434_v45, %v591_v1  ;;  %v156_v54 = vmul.f32 %v437_v46, %v591_v1  ;;  %v157_v55 = vmul.f32 %v438_v47, %v591_v1  ;;  %v446_v17 = vunpack.c.h.bf16 %v546_v0  ;;  %v552_v44 = vld [vmem:[%s1011_s0 + $0x70] sm:$0xff]  }
   0xe   :  { %v221_v56 = vadd.f32 %v605_v7, %v152_v48  ;;  %v222_v57 = vadd.f32 %v605_v7, %v153_v49  ;;  %v158_v58 = vmul.f32 %v441_v50, %v591_v1  ;;  %v159_v59 = vmul.f32 %v442_v51, %v591_v1  ;;  %v553_v49 = vld [vmem:[%s1011_s0 + $0x78] sm:$0xff]  }
   0xf   :  { %v223_v60 = vadd.f32 %v605_v7, %v154_v52  ;;  %v224_v61 = vadd.f32 %v605_v7, %v155_v53  ;;  %v225_v62 = vadd.f32 %v605_v7, %v156_v54  ;;  %v226_v63 = vadd.f32 %v605_v7, %v157_v55 }
  0x10   :  { %v285_v2 = vmax.f32 %v221_v56, 0.0  ;;  %v286_v3 = vmax.f32 %v222_v57, 0.0  ;;  %v227_v4 = vadd.f32 %v605_v7, %v158_v58  ;;  %v228_v5 = vadd.f32 %v605_v7, %v159_v59 }
  0x11   :  { %v287_v9 = vmax.f32 %v223_v60, 0.0  ;;  %v288_v10 = vmax.f32 %v224_v61, 0.0  ;;  %v289_v11 = vmax.f32 %v225_v62, 0.0  ;;  %v290_v12 = vmax.f32 %v226_v63, 0.0 }
  0x12   :  { %349 = vst [vmem:[%s1013_s2 + $0x40] sm:$0xff] %v285_v2  ;;  %350 = vst [vmem:[%s1013_s2 + $0x48] sm:$0xff] %v286_v3  ;;  %v291_v14 = vmax.f32 %v227_v4, 0.0  ;;  %v292_v15 = vmax.f32 %v228_v5, 0.0  ;;  %v449_v18 = vunpack.c.l.bf16 %v547_v6  ;;  %v450_v19 = vunpack.c.h.bf16 %v547_v6 }
  0x13   :  { %351 = vst [vmem:[%s1013_s2 + $0x50] sm:$0xff] %v287_v9  ;;  %352 = vst [vmem:[%s1013_s2 + $0x58] sm:$0xff] %v288_v10  ;;  %v453_v20 = vunpack.c.l.bf16 %v548_v8  ;;  %v454_v21 = vunpack.c.h.bf16 %v548_v8  ;;  %v160_v22 = vmul.f32 %v445_v16, %v591_v1  ;;  %v161_v23 = vmul.f32 %v446_v17, %v591_v1  ;;  %v555_v17 = vld [vmem:[%s1011_s0 + $0x88] sm:$0xff]  }
  0x14   :  { %353 = vst [vmem:[%s1013_s2 + $0x60] sm:$0xff] %v289_v11  ;;  %354 = vst [vmem:[%s1013_s2 + $0x68] sm:$0xff] %v290_v12  ;;  %v457_v24 = vunpack.c.l.bf16 %v549_v13  ;;  %v458_v25 = vunpack.c.h.bf16 %v549_v13  ;;  %v162_v26 = vmul.f32 %v449_v18, %v591_v1  ;;  %v163_v27 = vmul.f32 %v450_v19, %v591_v1  ;;  %v554_v12 = vld [vmem:[%s1011_s0 + $0x80] sm:$0xff]   ;;  %v556_v18 = vld [vmem:[%s1011_s0 + $0x90] sm:$0xff]  }
  0x15   :  { %355 = vst [vmem:[%s1013_s2 + $0x70] sm:$0xff] %v291_v14  ;;  %356 = vst [vmem:[%s1013_s2 + $0x78] sm:$0xff] %v292_v15  ;;  %v164_v28 = vmul.f32 %v453_v20, %v591_v1  ;;  %v165_v29 = vmul.f32 %v454_v21, %v591_v1  ;;  %v229_v30 = vadd.f32 %v605_v7, %v160_v22  ;;  %v461_v52 = vunpack.c.l.bf16 %v550_v38 }
  0x16   :  { %v230_v31 = vadd.f32 %v605_v7, %v161_v23  ;;  %v166_v32 = vmul.f32 %v457_v24, %v591_v1  ;;  %v167_v33 = vmul.f32 %v458_v25, %v591_v1  ;;  %v231_v34 = vadd.f32 %v605_v7, %v162_v26  ;;  %v557_v23 = vld [vmem:[%s1011_s0 + $0x98] sm:$0xff]  }
  0x17   :  { %v232_v35 = vadd.f32 %v605_v7, %v163_v27  ;;  %v233_v36 = vadd.f32 %v605_v7, %v164_v28  ;;  %v234_v37 = vadd.f32 %v605_v7, %v165_v29  ;;  %v293_v39 = vmax.f32 %v229_v30, 0.0 }
  0x18   :  { %v294_v40 = vmax.f32 %v230_v31, 0.0  ;;  %v235_v41 = vadd.f32 %v605_v7, %v166_v32  ;;  %v236_v42 = vadd.f32 %v605_v7, %v167_v33  ;;  %v295_v45 = vmax.f32 %v231_v34, 0.0 }
  0x19   :  { %v296_v46 = vmax.f32 %v232_v35, 0.0  ;;  %v297_v47 = vmax.f32 %v233_v36, 0.0  ;;  %v298_v48 = vmax.f32 %v234_v37, 0.0  ;;  %357 = vst [vmem:[%s1013_s2 + $0x80] sm:$0xff] %v293_v39  ;;  %v462_v53 = vunpack.c.h.bf16 %v550_v38 }
  0x1a   :  { %358 = vst [vmem:[%s1013_s2 + $0x88] sm:$0xff] %v294_v40  ;;  %v299_v50 = vmax.f32 %v235_v41, 0.0  ;;  %v300_v51 = vmax.f32 %v236_v42, 0.0  ;;  %359 = vst [vmem:[%s1013_s2 + $0x90] sm:$0xff] %v295_v45  ;;  %v465_v54 = vunpack.c.l.bf16 %v551_v43  ;;  %v466_v55 = vunpack.c.h.bf16 %v551_v43 }
  0x1b   :  { %360 = vst [vmem:[%s1013_s2 + $0x98] sm:$0xff] %v296_v46  ;;  %361 = vst [vmem:[%s1013_s2 + $0xa0] sm:$0xff] %v297_v47  ;;  %v469_v56 = vunpack.c.l.bf16 %v552_v44  ;;  %v470_v57 = vunpack.c.h.bf16 %v552_v44  ;;  %v168_v58 = vmul.f32 %v461_v52, %v591_v1  ;;  %v169_v59 = vmul.f32 %v462_v53, %v591_v1  ;;  %v559_v53 = vld [vmem:[%s1011_s0 + $0xa8] sm:$0xff]  }
  0x1c   :  { %362 = vst [vmem:[%s1013_s2 + $0xa8] sm:$0xff] %v298_v48  ;;  %363 = vst [vmem:[%s1013_s2 + $0xb0] sm:$0xff] %v299_v50  ;;  %v473_v60 = vunpack.c.l.bf16 %v553_v49  ;;  %v474_v61 = vunpack.c.h.bf16 %v553_v49  ;;  %v170_v62 = vmul.f32 %v465_v54, %v591_v1  ;;  %v171_v63 = vmul.f32 %v466_v55, %v591_v1  ;;  %v558_v48 = vld [vmem:[%s1011_s0 + $0xa0] sm:$0xff]   ;;  %v560_v54 = vld [vmem:[%s1011_s0 + $0xb0] sm:$0xff]  }
  0x1d   :  { %364 = vst [vmem:[%s1013_s2 + $0xb8] sm:$0xff] %v300_v51  ;;  %v172_v0 = vmul.f32 %v469_v56, %v591_v1  ;;  %v173_v2 = vmul.f32 %v470_v57, %v591_v1  ;;  %v237_v3 = vadd.f32 %v605_v7, %v168_v58  ;;  %v238_v4 = vadd.f32 %v605_v7, %v169_v59  ;;  %v561_v59 = vld [vmem:[%s1011_s0 + $0xb8] sm:$0xff]  }
  0x1e   :  { %v174_v5 = vmul.f32 %v473_v60, %v591_v1  ;;  %v175_v6 = vmul.f32 %v474_v61, %v591_v1  ;;  %v239_v8 = vadd.f32 %v605_v7, %v170_v62  ;;  %v240_v9 = vadd.f32 %v605_v7, %v171_v63 }
  0x1f   :  { %v241_v10 = vadd.f32 %v605_v7, %v172_v0  ;;  %v242_v11 = vadd.f32 %v605_v7, %v173_v2  ;;  %v301_v13 = vmax.f32 %v237_v3, 0.0  ;;  %v302_v14 = vmax.f32 %v238_v4, 0.0 }
  0x20   :  { %v243_v15 = vadd.f32 %v605_v7, %v174_v5  ;;  %v244_v16 = vadd.f32 %v605_v7, %v175_v6  ;;  %v303_v19 = vmax.f32 %v239_v8, 0.0  ;;  %v304_v20 = vmax.f32 %v240_v9, 0.0 }
  0x21   :  { %v305_v21 = vmax.f32 %v241_v10, 0.0  ;;  %v306_v22 = vmax.f32 %v242_v11, 0.0  ;;  %365 = vst [vmem:[%s1013_s2 + $0xc0] sm:$0xff] %v301_v13  ;;  %366 = vst [vmem:[%s1013_s2 + $0xc8] sm:$0xff] %v302_v14  ;;  %v477_v26 = vunpack.c.l.bf16 %v554_v12  ;;  %v478_v27 = vunpack.c.h.bf16 %v554_v12 }
  0x22   :  { %v307_v24 = vmax.f32 %v243_v15, 0.0  ;;  %v308_v25 = vmax.f32 %v244_v16, 0.0  ;;  %367 = vst [vmem:[%s1013_s2 + $0xd0] sm:$0xff] %v303_v19  ;;  %368 = vst [vmem:[%s1013_s2 + $0xd8] sm:$0xff] %v304_v20  ;;  %v481_v28 = vunpack.c.l.bf16 %v555_v17  ;;  %v482_v29 = vunpack.c.h.bf16 %v555_v17 }
  0x23   :  { %369 = vst [vmem:[%s1013_s2 + $0xe0] sm:$0xff] %v305_v21  ;;  %370 = vst [vmem:[%s1013_s2 + $0xe8] sm:$0xff] %v306_v22  ;;  %v485_v30 = vunpack.c.l.bf16 %v556_v18  ;;  %v486_v31 = vunpack.c.h.bf16 %v556_v18  ;;  %v176_v32 = vmul.f32 %v477_v26, %v591_v1  ;;  %v177_v33 = vmul.f32 %v478_v27, %v591_v1  ;;  %v562_v22 = vld [vmem:[%s1011_s0 + $0xc0] sm:$0xff]   ;;  %v563_v27 = vld [vmem:[%s1011_s0 + $0xc8] sm:$0xff]  }
  0x24   :  { %371 = vst [vmem:[%s1013_s2 + $0xf0] sm:$0xff] %v307_v24  ;;  %372 = vst [vmem:[%s1013_s2 + $0xf8] sm:$0xff] %v308_v25  ;;  %v489_v34 = vunpack.c.l.bf16 %v557_v23  ;;  %v490_v35 = vunpack.c.h.bf16 %v557_v23  ;;  %v178_v36 = vmul.f32 %v481_v28, %v591_v1  ;;  %v179_v37 = vmul.f32 %v482_v29, %v591_v1  ;;  %v564_v28 = vld [vmem:[%s1011_s0 + $0xd0] sm:$0xff]  }
  0x25   :  { %v180_v38 = vmul.f32 %v485_v30, %v591_v1  ;;  %v181_v39 = vmul.f32 %v486_v31, %v591_v1  ;;  %v245_v40 = vadd.f32 %v605_v7, %v176_v32  ;;  %v246_v41 = vadd.f32 %v605_v7, %v177_v33  ;;  %v565_v33 = vld [vmem:[%s1011_s0 + $0xd8] sm:$0xff]  }
  0x26   :  { %v182_v42 = vmul.f32 %v489_v34, %v591_v1  ;;  %v183_v43 = vmul.f32 %v490_v35, %v591_v1  ;;  %v247_v44 = vadd.f32 %v605_v7, %v178_v36  ;;  %v248_v45 = vadd.f32 %v605_v7, %v179_v37 }
  0x27   :  { %v249_v46 = vadd.f32 %v605_v7, %v180_v38  ;;  %v250_v47 = vadd.f32 %v605_v7, %v181_v39  ;;  %v309_v49 = vmax.f32 %v245_v40, 0.0  ;;  %v310_v50 = vmax.f32 %v246_v41, 0.0 }
  0x28   :  { %v251_v51 = vadd.f32 %v605_v7, %v182_v42  ;;  %v252_v52 = vadd.f32 %v605_v7, %v183_v43  ;;  %v311_v55 = vmax.f32 %v247_v44, 0.0  ;;  %v312_v56 = vmax.f32 %v248_v45, 0.0 }
  0x29   :  { %v313_v57 = vmax.f32 %v249_v46, 0.0  ;;  %v314_v58 = vmax.f32 %v250_v47, 0.0  ;;  %373 = vst [vmem:[%s1013_s2 + $0x100] sm:$0xff] %v309_v49  ;;  %374 = vst [vmem:[%s1013_s2 + $0x108] sm:$0xff] %v310_v50  ;;  %v493_v62 = vunpack.c.l.bf16 %v558_v48  ;;  %v494_v63 = vunpack.c.h.bf16 %v558_v48 }
  0x2a   :  { %v315_v60 = vmax.f32 %v251_v51, 0.0  ;;  %v316_v61 = vmax.f32 %v252_v52, 0.0  ;;  %375 = vst [vmem:[%s1013_s2 + $0x110] sm:$0xff] %v311_v55  ;;  %376 = vst [vmem:[%s1013_s2 + $0x118] sm:$0xff] %v312_v56  ;;  %v497_v0 = vunpack.c.l.bf16 %v559_v53  ;;  %v498_v2 = vunpack.c.h.bf16 %v559_v53 }
  0x2b   :  { %377 = vst [vmem:[%s1013_s2 + $0x120] sm:$0xff] %v313_v57  ;;  %378 = vst [vmem:[%s1013_s2 + $0x128] sm:$0xff] %v314_v58  ;;  %v501_v3 = vunpack.c.l.bf16 %v560_v54  ;;  %v502_v4 = vunpack.c.h.bf16 %v560_v54  ;;  %v184_v5 = vmul.f32 %v493_v62, %v591_v1  ;;  %v185_v6 = vmul.f32 %v494_v63, %v591_v1  ;;  %v566_v58 = vld [vmem:[%s1011_s0 + $0xe0] sm:$0xff]   ;;  %v567_v63 = vld [vmem:[%s1011_s0 + $0xe8] sm:$0xff]  }
  0x2c   :  { %379 = vst [vmem:[%s1013_s2 + $0x130] sm:$0xff] %v315_v60  ;;  %380 = vst [vmem:[%s1013_s2 + $0x138] sm:$0xff] %v316_v61  ;;  %v505_v8 = vunpack.c.l.bf16 %v561_v59  ;;  %v506_v9 = vunpack.c.h.bf16 %v561_v59  ;;  %v186_v10 = vmul.f32 %v497_v0, %v591_v1  ;;  %v187_v11 = vmul.f32 %v498_v2, %v591_v1  ;;  %v568_v0 = vld [vmem:[%s1011_s0 + $0xf0] sm:$0xff]  }
  0x2d   :  { %v188_v12 = vmul.f32 %v501_v3, %v591_v1  ;;  %v189_v13 = vmul.f32 %v502_v4, %v591_v1  ;;  %v253_v14 = vadd.f32 %v605_v7, %v184_v5  ;;  %v254_v15 = vadd.f32 %v605_v7, %v185_v6  ;;  %v569_v6 = vld [vmem:[%s1011_s0 + $0xf8] sm:$0xff]  }
  0x2e   :  { %v190_v16 = vmul.f32 %v505_v8, %v591_v1  ;;  %v191_v17 = vmul.f32 %v506_v9, %v591_v1  ;;  %v255_v18 = vadd.f32 %v605_v7, %v186_v10  ;;  %v256_v19 = vadd.f32 %v605_v7, %v187_v11 }
  0x2f   :  { %v257_v20 = vadd.f32 %v605_v7, %v188_v12  ;;  %v258_v21 = vadd.f32 %v605_v7, %v189_v13  ;;  %v317_v23 = vmax.f32 %v253_v14, 0.0  ;;  %v318_v24 = vmax.f32 %v254_v15, 0.0 }
  0x30   :  { %v259_v25 = vadd.f32 %v605_v7, %v190_v16  ;;  %v260_v26 = vadd.f32 %v605_v7, %v191_v17  ;;  %v319_v29 = vmax.f32 %v255_v18, 0.0  ;;  %v320_v30 = vmax.f32 %v256_v19, 0.0 }
  0x31   :  { %v321_v31 = vmax.f32 %v257_v20, 0.0  ;;  %v322_v32 = vmax.f32 %v258_v21, 0.0  ;;  %381 = vst [vmem:[%s1013_s2 + $0x140] sm:$0xff] %v317_v23  ;;  %382 = vst [vmem:[%s1013_s2 + $0x148] sm:$0xff] %v318_v24  ;;  %v509_v36 = vunpack.c.l.bf16 %v562_v22  ;;  %v510_v37 = vunpack.c.h.bf16 %v562_v22 }
  0x32   :  { %v323_v34 = vmax.f32 %v259_v25, 0.0  ;;  %v324_v35 = vmax.f32 %v260_v26, 0.0  ;;  %383 = vst [vmem:[%s1013_s2 + $0x150] sm:$0xff] %v319_v29  ;;  %384 = vst [vmem:[%s1013_s2 + $0x158] sm:$0xff] %v320_v30  ;;  %v513_v38 = vunpack.c.l.bf16 %v563_v27  ;;  %v514_v39 = vunpack.c.h.bf16 %v563_v27 }
  0x33   :  { %385 = vst [vmem:[%s1013_s2 + $0x160] sm:$0xff] %v321_v31  ;;  %386 = vst [vmem:[%s1013_s2 + $0x168] sm:$0xff] %v322_v32  ;;  %v517_v40 = vunpack.c.l.bf16 %v564_v28  ;;  %v518_v41 = vunpack.c.h.bf16 %v564_v28  ;;  %v192_v42 = vmul.f32 %v509_v36, %v591_v1  ;;  %v193_v43 = vmul.f32 %v510_v37, %v591_v1 }
  0x34   :  { %387 = vst [vmem:[%s1013_s2 + $0x170] sm:$0xff] %v323_v34  ;;  %388 = vst [vmem:[%s1013_s2 + $0x178] sm:$0xff] %v324_v35  ;;  %v521_v44 = vunpack.c.l.bf16 %v565_v33  ;;  %v522_v45 = vunpack.c.h.bf16 %v565_v33  ;;  %v194_v46 = vmul.f32 %v513_v38, %v591_v1  ;;  %v195_v47 = vmul.f32 %v514_v39, %v591_v1 }
  0x35   :  { %v196_v48 = vmul.f32 %v517_v40, %v591_v1  ;;  %v197_v49 = vmul.f32 %v518_v41, %v591_v1  ;;  %v261_v50 = vadd.f32 %v605_v7, %v192_v42  ;;  %v262_v51 = vadd.f32 %v605_v7, %v193_v43 }
  0x36   :  { %v198_v52 = vmul.f32 %v521_v44, %v591_v1  ;;  %v199_v53 = vmul.f32 %v522_v45, %v591_v1  ;;  %v263_v54 = vadd.f32 %v605_v7, %v194_v46  ;;  %v264_v55 = vadd.f32 %v605_v7, %v195_v47 }
  0x37   :  { %v265_v56 = vadd.f32 %v605_v7, %v196_v48  ;;  %v266_v57 = vadd.f32 %v605_v7, %v197_v49  ;;  %v325_v59 = vmax.f32 %v261_v50, 0.0  ;;  %v326_v60 = vmax.f32 %v262_v51, 0.0 }
  0x38   :  { %v267_v61 = vadd.f32 %v605_v7, %v198_v52  ;;  %v268_v62 = vadd.f32 %v605_v7, %v199_v53  ;;  %v327_v2 = vmax.f32 %v263_v54, 0.0  ;;  %v328_v3 = vmax.f32 %v264_v55, 0.0 }
  0x39   :  { %v329_v4 = vmax.f32 %v265_v56, 0.0  ;;  %v330_v5 = vmax.f32 %v266_v57, 0.0  ;;  %389 = vst [vmem:[%s1013_s2 + $0x180] sm:$0xff] %v325_v59  ;;  %390 = vst [vmem:[%s1013_s2 + $0x188] sm:$0xff] %v326_v60  ;;  %v525_v10 = vunpack.c.l.bf16 %v566_v58  ;;  %v526_v11 = vunpack.c.h.bf16 %v566_v58 }
  0x3a   :  { %v331_v8 = vmax.f32 %v267_v61, 0.0  ;;  %v332_v9 = vmax.f32 %v268_v62, 0.0  ;;  %391 = vst [vmem:[%s1013_s2 + $0x190] sm:$0xff] %v327_v2  ;;  %392 = vst [vmem:[%s1013_s2 + $0x198] sm:$0xff] %v328_v3  ;;  %v529_v12 = vunpack.c.l.bf16 %v567_v63  ;;  %v530_v13 = vunpack.c.h.bf16 %v567_v63 }
  0x3b   :  { %393 = vst [vmem:[%s1013_s2 + $0x1a0] sm:$0xff] %v329_v4  ;;  %394 = vst [vmem:[%s1013_s2 + $0x1a8] sm:$0xff] %v330_v5  ;;  %v533_v14 = vunpack.c.l.bf16 %v568_v0  ;;  %v534_v15 = vunpack.c.h.bf16 %v568_v0  ;;  %v200_v16 = vmul.f32 %v525_v10, %v591_v1  ;;  %v201_v17 = vmul.f32 %v526_v11, %v591_v1 }
  0x3c   :  { %395 = vst [vmem:[%s1013_s2 + $0x1b0] sm:$0xff] %v331_v8  ;;  %396 = vst [vmem:[%s1013_s2 + $0x1b8] sm:$0xff] %v332_v9  ;;  %v537_v18 = vunpack.c.l.bf16 %v569_v6  ;;  %v538_v19 = vunpack.c.h.bf16 %v569_v6  ;;  %v202_v20 = vmul.f32 %v529_v12, %v591_v1  ;;  %v203_v21 = vmul.f32 %v530_v13, %v591_v1 }
  0x3d   :  { %v204_v22 = vmul.f32 %v533_v14, %v591_v1  ;;  %v205_v23 = vmul.f32 %v534_v15, %v591_v1  ;;  %v269_v24 = vadd.f32 %v605_v7, %v200_v16  ;;  %v270_v25 = vadd.f32 %v605_v7, %v201_v17 }
  0x3e   :  { %v206_v26 = vmul.f32 %v537_v18, %v591_v1  ;;  %v207_v27 = vmul.f32 %v538_v19, %v591_v1  ;;  %v271_v28 = vadd.f32 %v605_v7, %v202_v20  ;;  %v272_v29 = vadd.f32 %v605_v7, %v203_v21 }
  0x3f   :  { %v273_v30 = vadd.f32 %v605_v7, %v204_v22  ;;  %v274_v31 = vadd.f32 %v605_v7, %v205_v23  ;;  %v333_v32 = vmax.f32 %v269_v24, 0.0  ;;  %v334_v33 = vmax.f32 %v270_v25, 0.0 }
  0x40   :  { %v275_v34 = vadd.f32 %v605_v7, %v206_v26  ;;  %v276_v35 = vadd.f32 %v605_v7, %v207_v27  ;;  %v335_v36 = vmax.f32 %v271_v28, 0.0  ;;  %v336_v37 = vmax.f32 %v272_v29, 0.0 }
  0x41   :  { %v337_v38 = vmax.f32 %v273_v30, 0.0  ;;  %v338_v39 = vmax.f32 %v274_v31, 0.0  ;;  %397 = vst [vmem:[%s1013_s2 + $0x1c0] sm:$0xff] %v333_v32  ;;  %398 = vst [vmem:[%s1013_s2 + $0x1c8] sm:$0xff] %v334_v33 }
  0x42   :  { %v339_v1 = vmax.f32 %v275_v34, 0.0  ;;  %v340_v40 = vmax.f32 %v276_v35, 0.0  ;;  %399 = vst [vmem:[%s1013_s2 + $0x1d0] sm:$0xff] %v335_v36  ;;  %400 = vst [vmem:[%s1013_s2 + $0x1d8] sm:$0xff] %v336_v37 }
  0x43   :  { %401 = vst [vmem:[%s1013_s2 + $0x1e0] sm:$0xff] %v337_v38  ;;  %402 = vst [vmem:[%s1013_s2 + $0x1e8] sm:$0xff] %v338_v39 }
  0x44   :  { %403 = vst [vmem:[%s1013_s2 + $0x1f0] sm:$0xff] %v339_v1  ;;  %404 = vst [vmem:[%s1013_s2 + $0x1f8] sm:$0xff] %v340_v40 }

// kernel: deconv_bn_relu.2
= control target key start
LH: loop header
LB: loop body
LE: loop exit
PB: predicated region body
PF: predicated region fallthrough
CT: control target
= control target key end

     0   :  { %s2966_s12 = smov 0   ;;  %s3880_s0 = inlined_call_operand.vmem [shape: bf16[4,10,18,64], index: 0, kind: input, shape index: {}]   ;;  %s3881_s1 = inlined_call_operand.vmem [shape: bf16[9,64,128], index: 1, kind: input, shape index: {}]   ;;  %s3882_s2 = inlined_call_operand.vmem [shape: bf16[4,128,128], index: 2, kind: output, shape index: {0}]   ;;  %s3883_s3 = inlined_call_operand.vmem [shape: f32[4,2,128], index: 3, kind: output, shape index: {1}]  }
   0x1 LB: > { %s2248_s13 = sadd.s32 4294967295, %s2944_s12   ;;  %p2252_p0 = scmp.ge.s32.totalorder %s2944_s12, 1  ;;  %s2944_s12 = sphi %s2966_s12, %s14_s12  }
   0x2   : > { %p140_p1 = scmp.lt.s32.totalorder %s2944_s12, 5 }
   0x4   : > { %p141_p2 = pnand %p2252_p0, %p140_p1 }
   0x6   : > { %144 = sbr.rel (%p141_p2) target bundleno = 390 (0x186), region = 28 }
   0xb   : > { %v2892_v0 = vld [vmem:[%s3881_s1 + $0x78] sm:$0xff]   ;;  %p168_p3 = scmp.lt.s32.totalorder %s2248_s13, 3  ;;  %v2893_v1 = vld [vmem:[%s3881_s1 + $0x70] sm:$0xff]   ;;  %v2894_v2 = vld [vmem:[%s3881_s1 + $0x68] sm:$0xff]   ;;  %vm1448_vm0 = vcmask 1042432   ;;  %vm1449_vm1 = vcmask 1046532  }
   0xc   : > { %2659 = vmatprep.subr.bf16.mxu0 %v2892_v0  ;;  %2875 = vmatprep.subr.bf16.mxu1 %v2892_v0  ;;  %vm294_vm2 = vcmask 523264   ;;  %v2895_v6 = vld [vmem:[%s3881_s1 + $0x60] sm:$0xff]   ;;  %vm3003_vm3 = vmor %vm1448_vm0, %vm1449_vm1  ;;  %v2900_v24 = vld [vmem:[%s3881_s1 + $0x18] sm:$0xff]   ;;  %vm699_vm4 = vsmask.f32 3328  ;;  %vm2159_vm7 = vcmask 1040384  }
   0xd   : > { %s3952_s13 = smov (!%p168_p3, %s2248_s13), 3  ;;  %2660 = vmatpush3.bf16.msra.mxu0 %v2892_v0  ;;  %2879 = vmatpush3.bf16.msra.mxu1 %v2892_v0  ;;  %v2901_v25 = vld [vmem:[%s3881_s1 + $0xd8] sm:$0xff]   ;;  %v2902_v34 = vld [vmem:[%s3881_s1 + $0x10] sm:$0xff]   ;;  %v2908_v46 = vld [vmem:[%s3881_s1 + $0x8] sm:$0xff]   ;;  %vm700_vm5 = vsmask.f32 7440 }
   0xe   : > { %2661 = vmatprep.subr.bf16.mxu0 %v2893_v1  ;;  %2876 = vmatprep.subr.bf16.mxu1 %v2893_v1  ;;  %s2883_s20 = smul.u32 120, %s3952_s13  ;;  %v2903_v35 = vld [vmem:[%s3881_s1 + $0xd0] sm:$0xff]   ;;  %v2909_v47 = vld [vmem:[%s3881_s1 + $0xc8] sm:$0xff]   ;;  %vm3271_vm6 = vmor %vm699_vm4, %vm700_vm5  ;;  %s2487_s16 = sshll.u32 %s3952_s13, 6 }
   0xf   : > { %v2933_v11 = vld [vmem:[%s3881_s1 + $0x110] sm:$0xff]   ;;  %s3832_s19 = scalar_lea.vmem %s3882_s2, %s2487_s16 }
  0x10   : > { %s2989_s23 = scalar_lea.vmem %s3880_s0, %s2883_s20  ;;  %s2256_s20 = sshll.u32 %s3952_s13, 1 }
  0x11   : > { %2662 = vmatpush3.bf16.msra.mxu0 %v2893_v1  ;;  %2880 = vmatpush3.bf16.msra.mxu1 %v2893_v1  ;;  %v186_v3 = vld [vmem:[%s2989_s23 + $0xc] sm:$0xf]  ;;  %v187_v4 = vld [vmem:[%s2989_s23 + $0x10] sm:$0xf]  ;;  %v2994_v5 = vld [vmem:[%s2989_s23 + $0x3c] sm:$0xf]  ;;  %s181_s24 = scalar_lea.vmem %s3883_s3, %s2256_s20 }
  0x12   : > { %2663 = vmatprep.subr.bf16.mxu0 %v2894_v2  ;;  %2877 = vmatprep.subr.bf16.mxu1 %v2894_v2  ;;  %v2999_v7 = vcombine.low %v186_v3, %v187_v4  ;;  %v727_v8 = vshrl.u32 %v186_v3, 16  ;;  %v730_v9 = vshll.u32 %v186_v3, 16  ;;  %v736_v10 = vshll.u32 %v187_v4, 16  ;;  %v3008_v12 = vld [vmem:[%s2989_s23 + $0x40] sm:$0xf] }
  0x13   : > { %3891 = vst [vmem:[#allocation2_spill] sm:$0xff] %v3008_v12  ;;  %v740_v13 = vshrl.u32 %v187_v4, 16  ;;  %v2390_v14 = vrot.slane %v186_v3, 9  ;;  %v1460_v15 = vrot.slane %v187_v4, 5  ;;  %v3012_v16 = vcombine.low %v2994_v5, %v3008_v12  ;;  %v3021_v18 = vld [vmem:[%s2989_s23 + $0x18] sm:$0xf] }
  0x14   : > { %2667 = vmatprep.mubr.msk.bf16.mxu0 %vm294_vm2, %v2999_v7  ;;  %v3024_v19 = vld [vmem:[%s2989_s23 + $0x1c] sm:$0xf]  ;;  %v729_v20 = vrot.slane %v727_v8, 4  ;;  %v732_v21 = vrot.slane %v730_v9, 5  ;;  %v3026_v22 = vrot.slane %v736_v10, 5  ;;  %v823_v28 = vshrl.u32 %v2994_v5, 16 }
  0x15   : > { %2664 = vmatpush3.bf16.msra.mxu0 %v2894_v2  ;;  %2881 = vmatpush3.bf16.msra.mxu1 %v2894_v2  ;;  %v3018_v17 = vsel %vm3003_vm3, %v2390_v14, %v1460_v15  ;;  %v742_v23 = vrot.slane %v740_v13, 4  ;;  %v3037_v26 = vld [vmem:[%s2989_s23 + $0x48] sm:$0xf]  ;;  %v3040_v27 = vld [vmem:[%s2989_s23 + $0x4c] sm:$0xf]  ;;  %v3045_v29 = vcombine.low %v3021_v18, %v3024_v19  ;;  %v826_v30 = vshll.u32 %v2994_v5, 16 }
  0x16   : > { %2665 = vmatprep.subr.bf16.mxu0 %v2895_v6  ;;  %2878 = vmatprep.subr.bf16.mxu1 %v2895_v6  ;;  %v733_v31 = vor.u32 %v732_v21, %v729_v20  ;;  %v832_v32 = vshll.u32 %v3008_v12, 16  ;;  %v3051_v33 = vcombine.low %v3037_v26, %v3040_v27  ;;  %v3060_v36 = vld [vmem:[%s2989_s23 + $0x24] sm:$0xf]  ;;  %v3063_v38 = vrot.slane %v1460_v15, 4  ;;  %v3067_v40 = vld [vmem:[%s2989_s23 + $0x28] sm:$0xf] }
  0x17   : > { %2675 = vmatprep.mubr.msk.bf16.mxu1 %vm294_vm2, %v3012_v16  ;;  %v743_v37 = vor.u32 %v742_v23, %v3026_v22  ;;  %v836_v39 = vshrl.u32 %v3008_v12, 16  ;;  %v3069_v41 = vrot.slane %v823_v28, 4  ;;  %v751_v42 = vshrl.u32 %v3021_v18, 16  ;;  %v3082_v45 = vld [vmem:[%s2989_s23 + $0x54] sm:$0xf]  ;;  %v2910_v4 = vld [vmem:[%s3881_s1] sm:$0xff]  }
  0x18   : > { %v754_v43 = vshll.u32 %v3021_v18, 16  ;;  %v3079_v44 = vcombine.low %v3060_v36, %v3067_v40  ;;  %v3090_v48 = vrot.slane %v826_v30, 5  ;;  %v2394_v49 = vrot.slane %v2994_v5, 9  ;;  %v3096_v52 = vld [vmem:[%s2989_s23 + $0x58] sm:$0xf]  ;;  %v2911_v5 = vld [vmem:[%s3881_s1 + $0xc0] sm:$0xff]  }
  0x19   : > { %2666 = vmatpush3.bf16.msra.mxu0 %v2895_v6  ;;  %2882 = vmatpush3.bf16.msra.mxu1 %v2895_v6  ;;  %v3884_v50 = vrot.slane %v3008_v12, 5  ;;  %v760_v51 = vshll.u32 %v3024_v19, 16  ;;  %v3098_v53 = vrot.slane %v733_v31, 4  ;;  %v3100_v54 = vrot.slane %v832_v32, 5  ;;  %v3107_v56 = vld [vmem:[%s2989_s23 + $0x30] sm:$0xf] }
  0x1a   : > { %2683 = vmatprep.subr.bf16.mxu1 %v2900_v24  ;;  %2707 = vmatprep.subr.bf16.mxu0 %v2901_v25  ;;  %v3104_v55 = vcombine.low %v3082_v45, %v3096_v52  ;;  %v3110_v57 = vld [vmem:[%s2989_s23 + $0x34] sm:$0xf]  ;;  %v3112_v58 = vrot.slane %v743_v37, 4  ;;  %v3114_v59 = vrot.slane %v836_v39, 4  ;;  %v764_v60 = vshrl.u32 %v3024_v19, 16  ;;  %v2913_v15 = vld [vmem:[%s3881_s1 + $0x38] sm:$0xff]  }
  0x1b   : > { %v3121_v62 = vld [vmem:[%s2989_s23 + $0x60] sm:$0xf]  ;;  %v753_v63 = vrot.slane %v751_v42, 4  ;;  %v756_v0 = vrot.slane %v754_v43, 5  ;;  %v3128_v2 = vcombine.low %v3107_v56, %v3110_v57  ;;  %v3131_v3 = vld [vmem:[%s2989_s23 + $0x64] sm:$0xf]  ;;  %v3150_v10 = vsel %vm3003_vm3, %v2394_v49, %v3884_v50 }
  0x1c   : > { %2668 = vmatmul.mubr.msk.bf16.vlgmr.msra.gmra.mxu0 %vm294_vm2, %v3045_v29  ;;  %2676 = vmatmul.mubr.msk.bf16.vlgmr.msra.gmra.mxu1 %vm294_vm2, %v3051_v33  ;;  %v3139_v6 = vrot.slane %v760_v51, 5  ;;  %v3144_v9 = vcombine.low %v3121_v62, %v3131_v3  ;;  %3892 = vst [vmem:[#allocation3_spill] sm:$0xff] %v3150_v10  ;;  %v3157_v13 = vld [vmem:[%s2989_s23] sm:$0xf]  ;;  %v3160_v14 = vld [vmem:[%s2989_s23 + $0x4] sm:$0xf] }
  0x1d   : > { %2684 = vmatpush3.bf16.msra.mxu1 %v2900_v24  ;;  %2708 = vmatpush3.bf16.msra.mxu0 %v2901_v25  ;;  %3893 = vst [vmem:[#allocation4_spill] sm:$0xff] %v3157_v13  ;;  %3894 = vst [vmem:[#allocation5_spill] sm:$0xff] %v3160_v14  ;;  %v766_v20 = vrot.slane %v764_v60, 4  ;;  %v775_v21 = vshrl.u32 %v3060_v36, 16  ;;  %v778_v23 = vshll.u32 %v3060_v36, 16  ;;  %v2285_v24 = vcombine.low %v3157_v13, %v3160_v14  ;;  %v2914_v25 = vld [vmem:[%s3881_s1 + $0x98] sm:$0xff]  }
  0x1e   : > { %2685 = vmatprep.subr.bf16.mxu1 %v2902_v34  ;;  %2709 = vmatprep.subr.bf16.mxu0 %v2903_v35  ;;  %v757_v28 = vor.u32 %v756_v0, %v753_v63  ;;  %v788_v31 = vshrl.u32 %v3067_v40, 16  ;;  %v2915_v39 = vld [vmem:[%s3881_s1 + $0x30] sm:$0xff]   ;;  %v799_v43 = vshrl.u32 %v3107_v56, 16  ;;  %v706_v49 = vshll.u32 %v3157_v13, 16  ;;  %v2917_v0 = vld [vmem:[%s3881_s1 + $0x28] sm:$0xff]  }
  0x1f   : > { %2671 = vmatprep.mubr.msk.bf16.mxu0 %vm294_vm2, %v3079_v44  ;;  %2679 = vmatprep.mubr.msk.bf16.mxu1 %vm294_vm2, %v3104_v55  ;;  %v767_v30 = vor.u32 %v766_v20, %v3139_v6  ;;  %v2916_v42 = vld [vmem:[%s3881_s1 + $0x90] sm:$0xff]   ;;  %v812_v60 = vshrl.u32 %v3110_v57, 16  ;;  %v716_v63 = vshrl.u32 %v3160_v14, 16  ;;  %v3228_v37 = vld [vmem:[%s2989_s23 + $0x20] sm:$0x1] }
  0x20   : > { %v3216_v20 = vld [vmem:[%s2989_s23 + $0x14] sm:$0x1]  ;;  %v790_v32 = vrot.slane %v788_v31, 4  ;;  %v801_v8 = vrot.slane %v799_v43, 4  ;;  %v3255_v31 = vld [vmem:[%s3881_s1 + $0x58] sm:$0xff]  }
  0x21   : > { %2686 = vmatpush3.bf16.msra.mxu1 %v2902_v34  ;;  %2710 = vmatpush3.bf16.msra.mxu0 %v2903_v35  ;;  %v3179_v35 = vrot.slane %v757_v28, 4  ;;  %v3196_v51 = vrot.slane %v767_v30, 4  ;;  %v2921_v28 = vld [vmem:[%s3881_s1 + $0x80] sm:$0xff]   ;;  %v718_v50 = vrot.slane %v716_v63, 4  ;;  %v3233_v34 = vld [vmem:[%s2989_s23 + $0x2c] sm:$0x1] }
  0x22   : > { %2687 = vmatprep.subr.bf16.mxu1 %v2908_v46  ;;  %2711 = vmatprep.subr.bf16.mxu0 %v2909_v47  ;;  %v3258_v43 = vld [vmem:[%s2989_s23 + $0x38] sm:$0x1]  ;;  %v3263_v1 = vld [vmem:[%s2989_s23 + $0x44] sm:$0x1] }
  0x24   : > { %2672 = vmatmul.mubr.msk.bf16.gmra.mxu0 %vm294_vm2, %v3128_v2  ;;  %2680 = vmatmul.mubr.msk.bf16.gmra.mxu1 %vm294_vm2, %v3144_v9 }
  0x25   : > { %2688 = vmatpush3.bf16.msra.mxu1 %v2908_v46  ;;  %2712 = vmatpush3.bf16.msra.mxu0 %v2909_v47  ;;  %v802_v46 = vshll.u32 %v3107_v56, 16  ;;  %v703_v47 = vshrl.u32 %v3157_v13, 16  ;;  %v3279_v13 = vld [vmem:[%s2989_s23 + $0x6c] sm:$0xf] }
  0x26   : > { %2689 = vmatprep.subr.bf16.mxu1 %v2910_v4  ;;  %2713 = vmatprep.subr.bf16.mxu0 %v2911_v5 }
  0x27   : > { %2691 = vmatprep.mubr.msk.bf16.mxu1 %vm294_vm2, %v2285_v24  ;;  %2715 = vmatprep.mubr.msk.bf16.mxu0 %vm294_vm2, %v3045_v29  ;;  %v705_v24 = vrot.slane %v703_v47, 4  ;;  %v780_v47 = vrot.slane %v778_v23, 5  ;;  %v770_v23 = vshll.u32 %v3228_v37, 16 }
  0x29   : > { %2690 = vmatpush3.bf16.msra.mxu1 %v2910_v4  ;;  %2714 = vmatpush3.bf16.msra.mxu0 %v2911_v5  ;;  %v712_v4 = vshll.u32 %v3160_v14, 16  ;;  %v2918_v5 = vld [vmem:[%s3881_s1 + $0x88] sm:$0xff]  }
  0x2a   : > { %2731 = vmatprep.subr.bf16.mxu1 %v2913_v15  ;;  %2755 = vmatprep.subr.bf16.mxu0 %v2914_v25 }
  0x2b   : > { %v3224_v30 = vrot.slane %v712_v4, 5 }
  0x2c   : > { %2692 = vmatmul.mubr.msk.bf16.vlgmr.msra.gmra.mxu1 %vm294_vm2, %v2999_v7  ;;  %2716 = vmatmul.mubr.msk.bf16.vlgmr.msra.gmra.mxu0 %vm294_vm2, %v3079_v44 }
  0x2d   : > { %2732 = vmatpush3.bf16.msra.mxu1 %v2913_v15  ;;  %2756 = vmatpush3.bf16.msra.mxu0 %v2914_v25  ;;  %v3213_v15 = vld [vmem:[%s2989_s23 + $0x8] sm:$0x1]  ;;  %v708_v25 = vrot.slane %v706_v49, 5  ;;  %v784_v49 = vshll.u32 %v3067_v40, 16 }
  0x2e   : > { %2695 = vmatprep.mubr.msk.bf16.mxu1 %vm294_vm2, %v3045_v29  ;;  %2719 = vmatprep.mubr.msk.bf16.mxu0 %vm294_vm2, %v3128_v2  ;;  %3895 = vst [vmem:[#allocation6_spill] sm:$0xff] %v3213_v15  ;;  %v2920_v29 = vld [vmem:[%s3881_s1 + $0x20] sm:$0xff]   ;;  %v722_v7 = vshll.u32 %v3213_v15, 16 }
  0x2f   : > { %2733 = vmatprep.subr.bf16.mxu1 %v2915_v39  ;;  %2757 = vmatprep.subr.bf16.mxu0 %v2916_v42  ;;  %v709_v63 = vor.u32 %v708_v25, %v705_v24  ;;  %v3239_v4 = vrot.slane %v784_v49, 5  ;;  %v808_v24 = vshll.u32 %v3110_v57, 16  ;;  %v794_v25 = vshll.u32 %v3233_v34, 16 }
  0x30   : > { %v814_v49 = vrot.slane %v812_v60, 4 }
  0x31   : > { %2734 = vmatpush3.bf16.msra.mxu1 %v2915_v39  ;;  %2758 = vmatpush3.bf16.msra.mxu0 %v2916_v42  ;;  %v746_v39 = vshll.u32 %v3216_v20, 16  ;;  %v777_v42 = vrot.slane %v775_v21, 4  ;;  %v719_v21 = vor.u32 %v718_v50, %v3224_v30  ;;  %v3265_v15 = vrot.slane %v808_v24, 5 }
  0x32   : > { %2735 = vmatprep.subr.bf16.mxu1 %v2917_v0  ;;  %2759 = vmatprep.subr.bf16.mxu0 %v2918_v5  ;;  %v710_v24 = vrot.slane %v709_v63, 4  ;;  %v796_v12 = vrot.slane %v794_v25, 5  ;;  %v3899_v63 = vshll.u32 %v3037_v26, 16 }
  0x33   : > { %v781_v50 = vor.u32 %v780_v47, %v777_v42  ;;  %v748_v61 = vrot.slane %v746_v39, 5  ;;  %v791_v42 = vor.u32 %v790_v32, %v3239_v4  ;;  %v839_v47 = vor.u32 %v3114_v59, %v3100_v54  ;;  %v3282_v39 = vld [vmem:[%s2989_s23 + $0x70] sm:$0xf] }
  0x34   : > { %2696 = vmatmul.mubr.msk.bf16.gmra.mxu1 %vm294_vm2, %v3079_v44  ;;  %2720 = vmatmul.mubr.msk.bf16.gmra.mxu0 %vm294_vm2, %v3012_v16  ;;  %v3250_v44 = vld [vmem:[%s3881_s1 + $0xf8] sm:$0xff]   ;;  %v720_v14 = vrot.slane %v719_v21, 4  ;;  %v739_v59 = vsel %vm3271_vm6, %v3098_v53, %v3026_v22  ;;  %v852_v21 = vrot.slane %v3899_v63, 5  ;;  %v2306_v25 = vcombine.low %v3279_v13, %v3282_v39 }
  0x35   : > { %2699 = vmatprep.mubr.msk.bf16.mxu1 %vm294_vm2, %v3128_v2  ;;  %2723 = vmatprep.mubr.msk.bf16.mxu0 %vm294_vm2, %v3051_v33  ;;  %v804_v2 = vrot.slane %v802_v46, 5  ;;  %v829_v46 = vor.u32 %v3090_v48, %v3069_v41  ;;  %v772_v41 = vrot.slane %v770_v23, 5  ;;  %v842_v48 = vshll.u32 %v3263_v1, 16 }
  0x36   : > { %2736 = vmatpush3.bf16.msra.mxu1 %v2917_v0  ;;  %2760 = vmatpush3.bf16.msra.mxu0 %v2918_v5  ;;  %v724_v5 = vrot.slane %v722_v7, 5  ;;  %v782_v10 = vrot.slane %v781_v50, 4  ;;  %v815_v7 = vor.u32 %v814_v49, %v3265_v15  ;;  %v749_v32 = vsel %vm3271_vm6, %v3112_v58, %v748_v61 }
  0x37   : > { %2737 = vmatprep.subr.bf16.mxu1 %v2920_v29  ;;  %2761 = vmatprep.subr.bf16.mxu0 %v2921_v28  ;;  %v805_v60 = vor.u32 %v804_v2, %v801_v8  ;;  %v818_v8 = vshll.u32 %v3258_v43, 16  ;;  %v792_v22 = vrot.slane %v791_v42, 4  ;;  %v830_v58 = vrot.slane %v829_v46, 4 }
  0x38   : > { %v840_v61 = vrot.slane %v839_v47, 4  ;;  %v715_v23 = vsel %vm3271_vm6, %v710_v24, %v3224_v30  ;;  %v844_v2 = vrot.slane %v842_v48, 5  ;;  %v856_v50 = vshll.u32 %v3040_v27, 16  ;;  %v3325_v30 = vld [vmem:[%s2989_s23 + $0x50] sm:$0x1] }
  0x39   : > { %v806_v53 = vrot.slane %v805_v60, 4  ;;  %v1463_v49 = vrot.slane %v3216_v20, 5  ;;  %v816_v46 = vrot.slane %v815_v7, 4  ;;  %v2328_v42 = vcombine.low %v739_v59, %v749_v32 }
  0x3a   : > { %2738 = vmatpush3.bf16.msra.mxu1 %v2920_v29  ;;  %2762 = vmatpush3.bf16.msra.mxu0 %v2921_v28  ;;  %v3898_v29 = vshrl.u32 %v3037_v26, 16  ;;  %v787_v20 = vsel %vm3271_vm6, %v782_v10, %v3239_v4  ;;  %v797_v47 = vsel %vm3271_vm6, %v792_v22, %v796_v12  ;;  %v835_v24 = vsel %vm3271_vm6, %v830_v58, %v3100_v54  ;;  %v3371_v22 = vld [vmem:[%s2989_s23 + $0x5c] sm:$0x1] }
  0x3b   : > { %2779 = vmatprep.subr.bf16.mxu1 %v3250_v44  ;;  %2803 = vmatprep.subr.bf16.mxu0 %v3255_v31  ;;  %v866_v4 = vshll.u32 %v3325_v30, 16  ;;  %v3901_v54 = vshrl.u32 %v3082_v45, 16  ;;  %v1464_v32 = vsel %vm3003_vm3, %v3063_v38, %v1463_v49 }
  0x3c   : > { %v849_v28 = vrot.slane %v3898_v29, 4  ;;  %2700 = vmatmul.mubr.msk.bf16.gmra.mxu1 %vm294_vm2, %v3012_v16  ;;  %2724 = vmatmul.mubr.msk.bf16.gmra.mxu0 %vm294_vm2, %v3104_v55  ;;  %v725_v16 = vsel %vm3271_vm6, %v720_v14, %v724_v5  ;;  %v773_v14 = vsel %vm3271_vm6, %v3196_v51, %v772_v41  ;;  %v3340_v51 = vrot.slane %v856_v50, 5 }
  0x3d   : > { %2703 = vmatprep.mubr.msk.bf16.mxu1 %vm294_vm2, %v3051_v33  ;;  %2727 = vmatprep.mubr.msk.bf16.mxu0 %vm294_vm2, %v3144_v9  ;;  %v820_v33 = vrot.slane %v818_v8, 5  ;;  %v763_v9 = vsel %vm3271_vm6, %v3179_v35, %v3139_v6  ;;  %v2327_v60 = vcombine.low %v715_v23, %v725_v16  ;;  %v811_v6 = vsel %vm3271_vm6, %v806_v53, %v3265_v15 }
  0x3e   : > { %v853_v5 = vor.u32 %v852_v21, %v849_v28  ;;  %v845_v35 = vsel %vm3271_vm6, %v840_v61, %v844_v2  ;;  %v3900_v41 = vshrl.u32 %v3040_v27, 16  ;;  %v3349_v48 = vrot.slane %v3901_v54, 4 }
  0x3f   : > { %v821_v12 = vsel %vm3271_vm6, %v816_v46, %v820_v33  ;;  %v880_v15 = vshll.u32 %v3096_v52, 16  ;;  %v3902_v8 = vshll.u32 %v3082_v45, 16  ;;  %v1092_v29 = vshll.u32 %v3121_v62, 16 }
  0x40   : > { %v862_v10 = vrot.slane %v3900_v41, 4  ;;  %v3352_v7 = vrot.slane %v853_v5, 4  ;;  %v1102_v28 = vshrl.u32 %v3131_v3, 16  ;;  %v3366_v63 = vcombine.low %v763_v9, %v773_v14 }
  0x41   : > { %v3356_v59 = vrot.slane %v3902_v8, 5  ;;  %v3368_v21 = vcombine.low %v787_v20, %v797_v47  ;;  %v3375_v38 = vcombine.low %v811_v6, %v821_v12  ;;  %v3377_v53 = vcombine.low %v835_v24, %v845_v35 }
  0x42   : > { %v863_v58 = vor.u32 %v862_v10, %v3340_v51  ;;  %v3384_v23 = vrot.slane %v880_v15, 5  ;;  %v3387_v16 = vcombine.low %v3018_v17, %v1464_v32  ;;  %v2391_v2 = vrot.slane %v3021_v18, 9 }
  0x43   : > { %v1467_v50 = vrot.slane %v3024_v19, 5  ;;  %v3395_v49 = vrot.slane %v866_v4, 5  ;;  %v877_v46 = vor.u32 %v3356_v59, %v3349_v48  ;;  %v890_v33 = vshll.u32 %v3371_v22, 16  ;;  %v3905_v48 = vld [vmem:[#allocation2_spill] sm:$0xff] }
  0x44   : > { %2704 = vmatmul.mubr.msk.bf16.gmra.mxu1 %vm294_vm2, %v3104_v55  ;;  %2728 = vmatmul.mubr.msk.bf16.gmra.mxu0 %vm294_vm2, %v2306_v25  ;;  %v3903_v55 = vshrl.u32 %v3096_v52, 16  ;;  %v859_v25 = vsel %vm3271_vm6, %v3352_v7, %v3340_v51  ;;  %v3904_v9 = vshrl.u32 %v3121_v62, 16  ;;  %v1470_v14 = vrot.slane %v3228_v37, 5  ;;  %v2924_v37 = vld [vmem:[%s3881_s1 + $0xf0] sm:$0xff]  }
  0x45   : > { %2739 = vmatprep.mubr.msk.bf16.mxu1 %vm294_vm2, %v2327_v60  ;;  %2763 = vmatprep.mubr.msk.bf16.mxu0 %vm294_vm2, %v2328_v42  ;;  %v1468_v18 = vsel %vm3003_vm3, %v2391_v2, %v1467_v50  ;;  %v1469_v19 = vrot.slane %v1467_v50, 4  ;;  %v3407_v5 = vrot.slane %v863_v58, 4  ;;  %v3409_v60 = vrot.slane %v1092_v29, 5  ;;  %v209_v29 = vld [vmem:[%s2989_s23 + $0x68] sm:$0x1] }
  0x46   : > { %v3382_v61 = vrot.slane %v3903_v55, 4  ;;  %v3402_v17 = vrot.slane %v3904_v9, 4  ;;  %v2392_v20 = vrot.slane %v3060_v36, 9  ;;  %v1474_v47 = vrot.slane %v3067_v40, 5  ;;  %v2925_v36 = vld [vmem:[%s3881_s1 + $0x50] sm:$0xff]   ;;  %v3907_v58 = vld [vmem:[#allocation3_spill] sm:$0xff] }
  0x47   : > { %v1098_v6 = vshll.u32 %v3131_v3, 16  ;;  %v1471_v35 = vsel %vm3003_vm3, %v1469_v19, %v1470_v14  ;;  %v1477_v41 = vrot.slane %v3233_v34, 5  ;;  %v2393_v4 = vrot.slane %v3107_v56, 9 }
  0x48   : > { %v887_v24 = vor.u32 %v3382_v61, %v3384_v23  ;;  %v3425_v10 = vcombine.low %v1468_v18, %v1471_v35  ;;  %v1475_v40 = vsel %vm3003_vm3, %v2392_v20, %v1474_v47  ;;  %v1476_v12 = vrot.slane %v1474_v47, 4 }
  0x49   : > { %v1481_v34 = vrot.slane %v3110_v57, 5  ;;  %v1484_v54 = vrot.slane %v3258_v43, 5  ;;  %v3906_v15 = vrot.slane %v3905_v48, 5  ;;  %v1491_v59 = vrot.slane %v3263_v1, 5  ;;  %v2926_v1 = vld [vmem:[%s3881_s1 + $0xe8] sm:$0xff]  }
  0x4a   : > { %v1478_v56 = vsel %vm3003_vm3, %v1476_v12, %v1477_v41  ;;  %v1495_v32 = vrot.slane %v3040_v27, 5  ;;  %v1498_v57 = vrot.slane %v3325_v30, 5  ;;  %v892_v30 = vrot.slane %v890_v33, 5  ;;  %v3908_v12 = vld [vmem:[#allocation5_spill] sm:$0xff] }
  0x4b   : > { %v1490_v8 = vrot.slane %v3906_v15, 4  ;;  %v1483_v27 = vrot.slane %v1481_v34, 4  ;;  %v878_v50 = vrot.slane %v877_v46, 4  ;;  %v3467_v9 = vrot.slane %v1098_v6, 5  ;;  %v2930_v15 = vld [vmem:[%s3881_s1 + $0xb8] sm:$0xff]  }
  0x4c   : > { %2740 = vmatmul.mubr.msk.bf16.vlgmr.msra.gmra.mxu1 %vm294_vm2, %v2328_v42  ;;  %2764 = vmatmul.mubr.msk.bf16.vlgmr.msra.gmra.mxu0 %vm294_vm2, %v3366_v63  ;;  %v2395_v42 = vrot.slane %v3037_v26, 9  ;;  %v1482_v26 = vsel %vm3003_vm3, %v2393_v4, %v1481_v34  ;;  %v1497_v2 = vrot.slane %v1495_v32, 4  ;;  %v1104_v18 = vrot.slane %v1102_v28, 4  ;;  %v3517_v34 = vld [vmem:[%s2989_s23 + $0x74] sm:$0x1] }
  0x4d   : > { %2780 = vmatpush3.bf16.msra.mxu1 %v3250_v44  ;;  %2804 = vmatpush3.bf16.msra.mxu0 %v3255_v31  ;;  %v2927_v44 = vld [vmem:[%s3881_s1 + $0x48] sm:$0xff]   ;;  %v3455_v31 = vcombine.low %v1475_v40, %v1478_v56  ;;  %v1492_v43 = vsel %vm3003_vm3, %v1490_v8, %v1491_v59  ;;  %v1485_v19 = vsel %vm3003_vm3, %v1483_v27, %v1484_v54  ;;  %v2396_v46 = vrot.slane %v3082_v45, 9  ;;  %v2929_v45 = vld [vmem:[%s3881_s1 + $0x40] sm:$0xff]   ;;  %v2931_v8 = vld [vmem:[%s3881_s1 + $0x118] sm:$0xff]  }
  0x4e   : > { %2743 = vmatprep.mubr.msk.bf16.mxu1 %vm294_vm2, %v3366_v63  ;;  %2767 = vmatprep.mubr.msk.bf16.mxu0 %vm294_vm2, %v3368_v21  ;;  %v3463_v55 = vcombine.low %v3907_v58, %v1492_v43  ;;  %v1496_v61 = vsel %vm3003_vm3, %v2395_v42, %v1495_v32  ;;  %v1095_v33 = vor.u32 %v3409_v60, %v3402_v17  ;;  %v888_v47 = vrot.slane %v887_v24, 4  ;;  %v2928_v60 = vld [vmem:[%s3881_s1 + $0xe0] sm:$0xff]  }
  0x4f   : > { %2781 = vmatprep.subr.bf16.mxu1 %v2924_v37  ;;  %2805 = vmatprep.subr.bf16.mxu0 %v2925_v36  ;;  %v3475_v14 = vcombine.low %v1482_v26, %v1485_v19  ;;  %v1499_v20 = vsel %vm3003_vm3, %v1497_v2, %v1498_v57  ;;  %v1108_v6 = vshll.u32 %v209_v29, 16  ;;  %v1502_v35 = vrot.slane %v3096_v52, 5  ;;  %v3910_v2 = vld [vmem:[#allocation6_spill] sm:$0xff] }
  0x50   : > { %v3480_v28 = vcombine.low %v1496_v61, %v1499_v20  ;;  %v869_v17 = vsel %vm3271_vm6, %v3407_v5, %v3395_v49  ;;  %v1505_v24 = vrot.slane %v3371_v22, 5  ;;  %v2425_v41 = vrot.slane %v3121_v62, 9 }
  0x51   : > { %2782 = vmatpush3.bf16.msra.mxu1 %v2924_v37  ;;  %2806 = vmatpush3.bf16.msra.mxu0 %v2925_v36  ;;  %v1704_v37 = vrot.slane %v3131_v3, 5  ;;  %v883_v52 = vsel %vm3271_vm6, %v878_v50, %v3384_v23  ;;  %v1105_v49 = vor.u32 %v1104_v18, %v3467_v9  ;;  %v1503_v22 = vsel %vm3003_vm3, %v2396_v46, %v1502_v35 }
  0x52   : > { %2783 = vmatprep.subr.bf16.mxu1 %v2926_v1  ;;  %2807 = vmatprep.subr.bf16.mxu0 %v2927_v44  ;;  %v1504_v5 = vrot.slane %v1502_v35, 4  ;;  %v1707_v36 = vrot.slane %v209_v29, 5  ;;  %v2447_v40 = vrot.slane %v3279_v13, 9  ;;  %v893_v23 = vsel %vm3271_vm6, %v888_v47, %v892_v30  ;;  %v3909_v29 = vld [vmem:[#allocation4_spill] sm:$0xff] }
  0x53   : > { %v1705_v62 = vsel %vm3003_vm3, %v2425_v41, %v1704_v37  ;;  %v1706_v3 = vrot.slane %v1704_v37, 4  ;;  %v1453_v4 = vrot.slane %v3908_v12, 5  ;;  %v1864_v48 = vrot.slane %v3282_v39, 5 }
  0x54   : > { %2744 = vmatmul.mubr.msk.bf16.gmra.mxu1 %vm294_vm2, %v3368_v21  ;;  %2768 = vmatmul.mubr.msk.bf16.gmra.mxu0 %vm294_vm2, %v3375_v38  ;;  %v1506_v54 = vsel %vm3003_vm3, %v1504_v5, %v1505_v24  ;;  %v1867_v42 = vrot.slane %v3517_v34, 5  ;;  %v2333_v32 = vcombine.low %v859_v25, %v869_v17  ;;  %v3544_v26 = vcombine.low %v883_v52, %v893_v23  ;;  %v2937_v24 = vld [vmem:[%s3881_s1 + $0x100] sm:$0xff]  }
  0x55   : > { %2747 = vmatprep.mubr.msk.bf16.mxu1 %vm294_vm2, %v3375_v38  ;;  %2771 = vmatprep.mubr.msk.bf16.mxu0 %vm294_vm2, %v3377_v53  ;;  %v3528_v59 = vcombine.low %v1503_v22, %v1506_v54  ;;  %v1708_v56 = vsel %vm3003_vm3, %v1706_v3, %v1707_v36  ;;  %v1096_v27 = vrot.slane %v1095_v33, 4  ;;  %v1106_v43 = vrot.slane %v1105_v49, 4 }
  0x56   : > { %2784 = vmatpush3.bf16.msra.mxu1 %v2926_v1  ;;  %2808 = vmatpush3.bf16.msra.mxu0 %v2927_v44  ;;  %v3538_v57 = vcombine.low %v1705_v62, %v1708_v56  ;;  %v3542_v1 = vsel %vm3003_vm3, %v2447_v40, %v1864_v48  ;;  %v1866_v44 = vrot.slane %v1864_v48, 4  ;;  %v1110_v30 = vrot.slane %v1108_v6, 5 }
  0x57   : > { %2785 = vmatprep.subr.bf16.mxu1 %v2928_v60  ;;  %2809 = vmatprep.subr.bf16.mxu0 %v2929_v45  ;;  %v2389_v58 = vrot.slane %v3909_v29, 9  ;;  %v1455_v61 = vrot.slane %v1453_v4, 4  ;;  %v1456_v51 = vrot.slane %v3910_v2, 5  ;;  %v1101_v50 = vsel %vm3271_vm6, %v1096_v27, %v3467_v9  ;;  %v2932_v9 = vld [vmem:[%s3881_s1 + $0xb0] sm:$0xff]  }
  0x58   : > { %v3550_v7 = vsel %vm3003_vm3, %v1866_v44, %v1867_v42  ;;  %v1111_v18 = vsel %vm3271_vm6, %v1106_v43, %v1110_v30  ;;  %v1265_v47 = vshrl.u32 %v3279_v13, 16  ;;  %v1278_v6 = vshrl.u32 %v3282_v39, 16 }
  0x59   : > { %v2456_v25 = vcombine.low %v3542_v1, %v3550_v7  ;;  %v1454_v19 = vsel %vm3003_vm3, %v2389_v58, %v1453_v4  ;;  %v1457_v33 = vsel %vm3003_vm3, %v1455_v61, %v1456_v51  ;;  %v2355_v20 = vcombine.low %v1101_v50, %v1111_v18 }
  0x5a   : > { %2786 = vmatpush3.bf16.msra.mxu1 %v2928_v60  ;;  %2810 = vmatpush3.bf16.msra.mxu0 %v2929_v45  ;;  %v2405_v46 = vcombine.low %v1454_v19, %v1457_v33  ;;  %v1274_v35 = vshll.u32 %v3282_v39, 16  ;;  %v1267_v17 = vrot.slane %v1265_v47, 4  ;;  %v1280_v45 = vrot.slane %v1278_v6, 4 }
  0x5b   : > { %2827 = vmatprep.subr.bf16.mxu1 %v2930_v15  ;;  %2851 = vmatprep.subr.bf16.mxu0 %v2931_v8  ;;  %v1284_v52 = vshll.u32 %v3517_v34, 16 }
  0x5c   : > { %2748 = vmatmul.mubr.msk.bf16.gmra.mxu1 %vm294_vm2, %v3377_v53  ;;  %2772 = vmatmul.mubr.msk.bf16.gmra.mxu0 %vm294_vm2, %v2333_v32  ;;  %v1276_v60 = vrot.slane %v1274_v35, 5 }
  0x5d   : > { %2751 = vmatprep.mubr.msk.bf16.mxu1 %vm294_vm2, %v2333_v32  ;;  %2775 = vmatprep.mubr.msk.bf16.mxu0 %vm294_vm2, %v3544_v26  ;;  %v1286_v5 = vrot.slane %v1284_v52, 5 }
  0x5e   : > { %v1281_v37 = vor.u32 %v1280_v45, %v1276_v60 }
  0x60   : > { %v1282_v22 = vrot.slane %v1281_v37, 4 }
  0x62   : > { %v1287_v62 = vsel %vm3271_vm6, %v1282_v22, %v1286_v5 }
  0x64   : > { %2752 = vmatmul.mubr.msk.bf16.gmra.mxu1 %vm294_vm2, %v3544_v26  ;;  %2776 = vmatmul.mubr.msk.bf16.gmra.mxu0 %vm294_vm2, %v2355_v20 }
  0x65   : > { %2787 = vmatprep.mubr.msk.bf16.mxu1 %vm294_vm2, %v3366_v63  ;;  %2811 = vmatprep.mubr.msk.bf16.mxu0 %vm294_vm2, %v2405_v46  ;;  %v1268_v63 = vshll.u32 %v3279_v13, 16  ;;  %v2935_v13 = vld [vmem:[%s3881_s1 + $0x108] sm:$0xff]  }
  0x67   : > { %v1270_v39 = vrot.slane %v1268_v63, 5 }
  0x69   : > { %v1271_v41 = vor.u32 %v1270_v39, %v1267_v17 }
  0x6b   : > { %v1272_v49 = vrot.slane %v1271_v41, 4 }
  0x6c   : > { %2788 = vmatmul.mubr.msk.bf16.vlgmr.msra.gmra.mxu1 %vm294_vm2, %v3368_v21  ;;  %2812 = vmatmul.mubr.msk.bf16.vlgmr.msra.gmra.mxu0 %vm294_vm2, %v3387_v16  ;;  %v2934_v21 = vld [vmem:[%s3881_s1 + $0xa8] sm:$0xff]  }
  0x6d   : > { %2828 = vmatpush3.bf16.msra.mxu1 %v2930_v15  ;;  %2852 = vmatpush3.bf16.msra.mxu0 %v2931_v8 }
  0x6e   : > { %2791 = vmatprep.mubr.msk.bf16.mxu1 %vm294_vm2, %v3375_v38  ;;  %2815 = vmatprep.mubr.msk.bf16.mxu0 %vm294_vm2, %v3425_v10  ;;  %v2936_v38 = vld [vmem:[%s3881_s1 + $0xa0] sm:$0xff]  }
  0x6f   : > { %2829 = vmatprep.subr.bf16.mxu1 %v2932_v9  ;;  %2853 = vmatprep.subr.bf16.mxu0 %v2933_v11 }
  0x71   : > { %2830 = vmatpush3.bf16.msra.mxu1 %v2932_v9  ;;  %2854 = vmatpush3.bf16.msra.mxu0 %v2933_v11 }
  0x72   : > { %2831 = vmatprep.subr.bf16.mxu1 %v2934_v21  ;;  %2855 = vmatprep.subr.bf16.mxu0 %v2935_v13 }
  0x74   : > { %2792 = vmatmul.mubr.msk.bf16.gmra.mxu1 %vm294_vm2, %v3377_v53  ;;  %2816 = vmatmul.mubr.msk.bf16.gmra.mxu0 %vm294_vm2, %v3455_v31  ;;  %v1277_v53 = vsel %vm3271_vm6, %v1272_v49, %v1276_v60 }
  0x75   : > { %2795 = vmatprep.mubr.msk.bf16.mxu1 %vm294_vm2, %v2333_v32  ;;  %2819 = vmatprep.mubr.msk.bf16.mxu0 %vm294_vm2, %v3475_v14  ;;  %v2376_v3 = vcombine.low %v1277_v53, %v1287_v62 }
  0x76   : > { %2832 = vmatpush3.bf16.msra.mxu1 %v2934_v21  ;;  %2856 = vmatpush3.bf16.msra.mxu0 %v2935_v13 }
  0x77   : > { %2833 = vmatprep.subr.bf16.mxu1 %v2936_v38  ;;  %2857 = vmatprep.subr.bf16.mxu0 %v2937_v24 }
  0x7a   : > { %2834 = vmatpush3.bf16.msra.mxu1 %v2936_v38  ;;  %2858 = vmatpush3.bf16.msra.mxu0 %v2937_v24 }
  0x7c   : > { %2796 = vmatmul.mubr.msk.bf16.gmra.mxu1 %vm294_vm2, %v3544_v26  ;;  %2820 = vmatmul.mubr.msk.bf16.gmra.mxu0 %vm294_vm2, %v3463_v55 }
  0x7d   : > { %2799 = vmatprep.mubr.msk.bf16.mxu1 %vm294_vm2, %v2355_v20  ;;  %2823 = vmatprep.mubr.msk.bf16.mxu0 %vm294_vm2, %v3480_v28 }
  0x84   : > { %2800 = vmatmul.mubr.msk.bf16.gmra.mxu1 %vm294_vm2, %v2376_v3  ;;  %2824 = vmatmul.mubr.msk.bf16.gmra.mxu0 %vm294_vm2, %v3528_v59 }
  0x85   : > { %2835 = vmatprep.mubr.msk.bf16.mxu1 %vm294_vm2, %v3387_v16  ;;  %2859 = vmatprep.mubr.msk.bf16.mxu0 %vm294_vm2, %v3425_v10 }
  0x8c   : > { %2836 = vmatmul.mubr.msk.bf16.vlgmr.msra.gmra.mxu1 %vm294_vm2, %v3425_v10  ;;  %2860 = vmatmul.mubr.msk.bf16.vlgmr.msra.gmra.mxu0 %vm294_vm2, %v3455_v31 }
  0x8d   : > { %2839 = vmatprep.mubr.msk.bf16.mxu1 %vm294_vm2, %v3455_v31  ;;  %2863 = vmatprep.mubr.msk.bf16.mxu0 %vm294_vm2, %v3475_v14 }
  0x94   : > { %2840 = vmatmul.mubr.msk.bf16.gmra.mxu1 %vm294_vm2, %v3475_v14  ;;  %2864 = vmatmul.mubr.msk.bf16.gmra.mxu0 %vm294_vm2, %v3463_v55 }
  0x95   : > { %2843 = vmatprep.mubr.msk.bf16.mxu1 %vm294_vm2, %v3463_v55  ;;  %2867 = vmatprep.mubr.msk.bf16.mxu0 %vm294_vm2, %v3480_v28 }
  0x9c   : > { %2844 = vmatmul.mubr.msk.bf16.gmra.mxu1 %vm294_vm2, %v3480_v28  ;;  %2868 = vmatmul.mubr.msk.bf16.gmra.mxu0 %vm294_vm2, %v3528_v59 }
  0x9d   : > { %2847 = vmatprep.mubr.msk.bf16.mxu1 %vm294_vm2, %v3528_v59  ;;  %2871 = vmatprep.mubr.msk.bf16.mxu0 %vm294_vm2, %v3538_v57 }
  0xa4   : > { %2848 = vmatmul.mubr.msk.bf16.gmra.mxu1 %vm294_vm2, %v3538_v57  ;;  %2872 = vmatmul.mubr.msk.bf16.gmra.mxu0 %vm294_vm2, %v2456_v25 }
  0xdc   : > { %v2669_v0 = vpop.f32.mrf.mxu0  ;;  %v2677_v16 = vpop.f32.mrf.mxu1 }
  0xde   : > { %v353_v10 = vpop.f32.mrf.mxu0  ;;  %v385_v31 = vpop.f32.mrf.mxu1 }
  0xe0   : > { %v2670_v55 = vpop.f32.mrf.mxu0  ;;  %v2678_v14 = vpop.f32.mrf.mxu1 }
  0xe2   : > { %v356_v28 = vpop.f32.mrf.mxu0  ;;  %v388_v36 = vpop.f32.mrf.mxu1 }
  0xe4   : > { %v2673_v40 = vpop.f32.mrf.mxu0  ;;  %v2681_v23 = vpop.f32.mrf.mxu1 }
  0xe6   : > { %v369_v12 = vpop.f32.mrf.mxu0  ;;  %v401_v4 = vpop.f32.mrf.mxu1 }
  0xe8   : > { %v2674_v34 = vpop.f32.mrf.mxu0  ;;  %v2682_v54 = vpop.f32.mrf.mxu1 }
  0xea   : > { %v372_v48 = vpop.f32.mrf.mxu0  ;;  %v3661_v15 = vpop.f32.mrf.mxu1 }
  0xec   : > { %v2693_v8 = vpop.f32.mrf.mxu1  ;;  %v2717_v59 = vpop.f32.mrf.mxu0 }
  0xed   : > { %v491_v56 = vadd.f32 %v2693_v8, %v2669_v0 }
  0xee   : > { %v482_v42 = vpop.f32.mrf.mxu1  ;;  %v620_v32 = vpop.f32.mrf.mxu0 }
  0xef   : > { %v3663_v57 = vadd.f32 %v2717_v59, %v491_v56  ;;  %v483_v1 = vadd.f32 %v482_v42, %v353_v10 }
  0xf0   : > { %v2694_v44 = vpop.f32.mrf.mxu1  ;;  %v2718_v26 = vpop.f32.mrf.mxu0 }
  0xf1   : > { %v3665_v27 = vadd.f32 %v620_v32, %v483_v1  ;;  %v494_v43 = vadd.f32 %v2694_v44, %v2670_v55 }
  0xf2   : > { %v485_v30 = vpop.f32.mrf.mxu1  ;;  %v623_v29 = vpop.f32.mrf.mxu0 }
  0xf3   : > { %v3667_v58 = vadd.f32 %v2718_v26, %v494_v43  ;;  %v486_v61 = vadd.f32 %v485_v30, %v356_v28 }
  0xf4   : > { %v2697_v2 = vpop.f32.mrf.mxu1  ;;  %v2721_v51 = vpop.f32.mrf.mxu0 }
  0xf5   : > { %v3669_v7 = vadd.f32 %v623_v29, %v486_v61  ;;  %v507_v25 = vadd.f32 %v2697_v2, %v2673_v40 }
  0xf6   : > { %v498_v50 = vpop.f32.mrf.mxu1  ;;  %v636_v18 = vpop.f32.mrf.mxu0 }
  0xf7   : > { %v3671_v19 = vadd.f32 %v2721_v51, %v507_v25  ;;  %v499_v33 = vadd.f32 %v498_v50, %v369_v12 }
  0xf8   : > { %v2698_v20 = vpop.f32.mrf.mxu1  ;;  %v2722_v46 = vpop.f32.mrf.mxu0 }
  0xf9   : > { %v3673_v9 = vadd.f32 %v636_v18, %v499_v33  ;;  %v510_v11 = vadd.f32 %v2698_v20, %v2674_v34 }
  0xfa   : > { %v501_v47 = vpop.f32.mrf.mxu1  ;;  %v639_v63 = vpop.f32.mrf.mxu0 }
  0xfb   : > { %v3675_v6 = vadd.f32 %v2722_v46, %v510_v11  ;;  %v502_v35 = vadd.f32 %v501_v47, %v372_v48 }
  0xfc   : > { %v2701_v21 = vpop.f32.mrf.mxu1  ;;  %v2725_v13 = vpop.f32.mrf.mxu0 }
  0xfd   : > { %v3677_v17 = vadd.f32 %v639_v63, %v502_v35  ;;  %v523_v39 = vadd.f32 %v2701_v21, %v2677_v16 }
  0xfe   : > { %v514_v60 = vpop.f32.mrf.mxu1  ;;  %v652_v45 = vpop.f32.mrf.mxu0 }
  0xff   : > { %v3679_v38 = vadd.f32 %v2725_v13, %v523_v39  ;;  %v515_v24 = vadd.f32 %v514_v60, %v385_v31 }
 0x100   : > { %v2702_v41 = vpop.f32.mrf.mxu1  ;;  %v2726_v37 = vpop.f32.mrf.mxu0 }
 0x101   : > { %v3681_v52 = vadd.f32 %v652_v45, %v515_v24  ;;  %v526_v49 = vadd.f32 %v2702_v41, %v2678_v14 }
 0x102   : > { %v517_v22 = vpop.f32.mrf.mxu1  ;;  %v655_v5 = vpop.f32.mrf.mxu0 }
 0x103   : > { %v3683_v53 = vadd.f32 %v2726_v37, %v526_v49  ;;  %v518_v62 = vadd.f32 %v517_v22, %v388_v36 }
 0x104   : > { %v2705_v3 = vpop.f32.mrf.mxu1  ;;  %v2729_v0 = vpop.f32.mrf.mxu0 }
 0x105   : > { %v3685_v10 = vadd.f32 %v655_v5, %v518_v62  ;;  %v539_v16 = vadd.f32 %v2705_v3, %v2681_v23 }
 0x106   : > { %v530_v55 = vpop.f32.mrf.mxu1  ;;  %v668_v28 = vpop.f32.mrf.mxu0 }
 0x107   : > { %v3687_v40 = vadd.f32 %v2729_v0, %v539_v16  ;;  %v531_v31 = vadd.f32 %v530_v55, %v401_v4 }
 0x108   : > { %v2706_v12 = vpop.f32.mrf.mxu1  ;;  %v2730_v34 = vpop.f32.mrf.mxu0 }
 0x109   : > { %v3689_v48 = vadd.f32 %v668_v28, %v531_v31  ;;  %v542_v14 = vadd.f32 %v2706_v12, %v2682_v54 }
 0x10a   : > { %v533_v8 = vpop.f32.mrf.mxu1  ;;  %v671_v59 = vpop.f32.mrf.mxu0 }
 0x10b   : > { %v3691_v56 = vadd.f32 %v2730_v34, %v542_v14  ;;  %v534_v36 = vadd.f32 %v533_v8, %v3661_v15 }
 0x10c   : > { %v2741_v42 = vpop.f32.mrf.mxu1  ;;  %v3694_v32 = vpop.f32.mrf.mxu0 }
 0x10d   : > { %3911 = vst [vmem:[#allocation2_spill] sm:$0xff] %v3691_v56  ;;  %v3696_v23 = vadd.f32 %v671_v59, %v534_v36 }
 0x10e   : > { %v1009_v1 = vpop.f32.mrf.mxu1  ;;  %v1185_v44 = vpop.f32.mrf.mxu0 }
 0x10f   : > { %3912 = vst [vmem:[#allocation3_spill] sm:$0xff] %v3696_v23 }
 0x110   : > { %v2742_v26 = vpop.f32.mrf.mxu1  ;;  %v3698_v4 = vpop.f32.mrf.mxu0 }
 0x112   : > { %v1012_v43 = vpop.f32.mrf.mxu1  ;;  %v3700_v30 = vpop.f32.mrf.mxu0 }
 0x114   : > { %v3702_v54 = vpop.f32.mrf.mxu1  ;;  %v3704_v29 = vpop.f32.mrf.mxu0 }
 0x116   : > { %v3706_v61 = vpop.f32.mrf.mxu1  ;;  %v3708_v15 = vpop.f32.mrf.mxu0 }
 0x118   : > { %v3710_v2 = vpop.f32.mrf.mxu1  ;;  %v3712_v51 = vpop.f32.mrf.mxu0 }
 0x11a   : > { %v3714_v25 = vpop.f32.mrf.mxu1  ;;  %v3716_v50 = vpop.f32.mrf.mxu0 }
 0x11c   : > { %v3718_v18 = vpop.f32.mrf.mxu1  ;;  %v3720_v33 = vpop.f32.mrf.mxu0 }
 0x11e   : > { %v3722_v20 = vpop.f32.mrf.mxu1  ;;  %v3724_v46 = vpop.f32.mrf.mxu0 }
 0x120   : > { %v3726_v11 = vpop.f32.mrf.mxu1  ;;  %v3728_v47 = vpop.f32.mrf.mxu0 }
 0x122   : > { %v3730_v63 = vpop.f32.mrf.mxu1  ;;  %v3732_v35 = vpop.f32.mrf.mxu0 }
 0x124   : > { %v3734_v21 = vpop.f32.mrf.mxu1  ;;  %v3736_v13 = vpop.f32.mrf.mxu0 }
 0x125   : > { %3913 = vst [vmem:[#allocation5_spill] sm:$0xff] %v3736_v13 }
 0x126   : > { %v3738_v39 = vpop.f32.mrf.mxu1  ;;  %v3740_v60 = vpop.f32.mrf.mxu0 }
 0x127   : > { %3914 = vst [vmem:[#allocation4_spill] sm:$0xff] %v3740_v60 }
 0x128   : > { %v3742_v45 = vpop.f32.mrf.mxu1  ;;  %v3744_v24 = vpop.f32.mrf.mxu0 }
 0x129   : > { %3915 = vst [vmem:[#allocation6_spill] sm:$0xff] %v3742_v45  ;;  %3916 = vst [vmem:[#allocation7_spill] sm:$0xff] %v3744_v24 }
 0x12a   : > { %v3746_v41 = vpop.f32.mrf.mxu1  ;;  %v3748_v37 = vpop.f32.mrf.mxu0 }
 0x12b   : > { %3917 = vst [vmem:[#allocation8_spill] sm:$0xff] %v3746_v41  ;;  %3918 = vst [vmem:[#allocation9_spill] sm:$0xff] %v3748_v37 }
 0x12c   : > { %v2789_v49 = vpop.f32.mrf.mxu1  ;;  %v2813_v22 = vpop.f32.mrf.mxu0 }
 0x12e   : > { %v1361_v5 = vpop.f32.mrf.mxu1  ;;  %v1622_v62 = vpop.f32.mrf.mxu0 }
 0x130   : > { %v2790_v3 = vpop.f32.mrf.mxu1  ;;  %v2814_v0 = vpop.f32.mrf.mxu0 }
 0x132   : > { %v1364_v16 = vpop.f32.mrf.mxu1  ;;  %v1625_v55 = vpop.f32.mrf.mxu0 }
 0x134   : > { %v2793_v28 = vpop.f32.mrf.mxu1  ;;  %v3750_v31 = vpop.f32.mrf.mxu0 }
 0x136   : > { %v3752_v12 = vpop.f32.mrf.mxu1  ;;  %v3754_v34 = vpop.f32.mrf.mxu0 }
 0x137   : > { %3919 = vst [vmem:[#allocation10_spill] sm:$0xff] %v3754_v34 }
 0x138   : > { %v2794_v14 = vpop.f32.mrf.mxu1  ;;  %v3756_v8 = vpop.f32.mrf.mxu0 }
 0x139   : > { %3920 = vst [vmem:[#allocation11_spill] sm:$0xff] %v3756_v8  ;;  %v1074_v8 = vadd.f32 %v2741_v42, %v3663_v57 }
 0x13a   : > { %v3758_v59 = vpop.f32.mrf.mxu1  ;;  %v3760_v36 = vpop.f32.mrf.mxu0 }
 0x13b   : > { %3921 = vst [vmem:[#allocation12_spill] sm:$0xff] %v3760_v36  ;;  %v1072_v36 = vadd.f32 %v1009_v1, %v3665_v27 }
 0x13c   : > { %v3762_v37 = vpop.f32.mrf.mxu1  ;;  %v3764_v41 = vpop.f32.mrf.mxu0 }
 0x13d   : > { %3922 = vst [vmem:[#allocation13_spill] sm:$0xff] %v3762_v37  ;;  %3923 = vst [vmem:[#allocation14_spill] sm:$0xff] %v3764_v41  ;;  %v1075_v41 = vadd.f32 %v2742_v26, %v3667_v58  ;;  %v1078_v58 = vadd.f32 %v3702_v54, %v3671_v19 }
 0x13e   : > { %v3766_v23 = vpop.f32.mrf.mxu1  ;;  %v3768_v24 = vpop.f32.mrf.mxu0 }
 0x13f   : > { %3924 = vst [vmem:[#allocation15_spill] sm:$0xff] %v3766_v23  ;;  %3925 = vst [vmem:[#allocation16_spill] sm:$0xff] %v3768_v24  ;;  %v1251_v27 = vadd.f32 %v3698_v4, %v1075_v41  ;;  %v1254_v41 = vadd.f32 %v3704_v29, %v1078_v58  ;;  %v1081_v29 = vadd.f32 %v3730_v63, %v3685_v10 }
 0x140   : > { %v3770_v60 = vpop.f32.mrf.mxu1  ;;  %v3772_v13 = vpop.f32.mrf.mxu0 }
 0x141   : > { %3926 = vst [vmem:[#allocation17_spill] sm:$0xff] %v3770_v60  ;;  %3927 = vst [vmem:[#allocation18_spill] sm:$0xff] %v3772_v13  ;;  %v1250_v13 = vadd.f32 %v3694_v32, %v1074_v8  ;;  %v1248_v60 = vadd.f32 %v1185_v44, %v1072_v36  ;;  %v1427_v44 = vadd.f32 %v2790_v3, %v1251_v27 }
 0x142   : > { %v3774_v34 = vpop.f32.mrf.mxu1  ;;  %v3776_v45 = vpop.f32.mrf.mxu0 }
 0x143   : > { %3928 = vst [vmem:[#allocation19_spill] sm:$0xff] %v3774_v34  ;;  %3929 = vst [vmem:[#allocation20_spill] sm:$0xff] %v3776_v45  ;;  %v1073_v34 = vadd.f32 %v1012_v43, %v3669_v7  ;;  %v1426_v42 = vadd.f32 %v2789_v49, %v1250_v13  ;;  %v1424_v1 = vadd.f32 %v1361_v5, %v1248_v60 }
 0x144   : > { %v3780_v56 = vpop.f32.mrf.mxu1  ;;  %v3782_v37 = vpop.f32.mrf.mxu0  ;;  %v1076_v7 = vadd.f32 %v3706_v61, %v3673_v9  ;;  %v1079_v43 = vadd.f32 %v3710_v2, %v3675_v6  ;;  %v1077_v13 = vadd.f32 %v3714_v25, %v3677_v17  ;;  %v1080_v9 = vadd.f32 %v3722_v20, %v3681_v52 }
 0x145   : > { %3930 = vst [vmem:[#allocation21_spill] sm:$0xff] %v3782_v37  ;;  %v1249_v32 = vadd.f32 %v3700_v30, %v1073_v34  ;;  %v1687_v60 = vadd.f32 %v2813_v22, %v1426_v42  ;;  %v1685_v19 = vadd.f32 %v1622_v62, %v1424_v1  ;;  %v1082_v30 = vadd.f32 %v3718_v18, %v3679_v38  ;;  %v3931_v42 = vld [vmem:[#allocation2_spill] sm:$0xff] }
 0x146   : > { %v3785_v23 = vpop.f32.mrf.mxu1  ;;  %v3787_v24 = vpop.f32.mrf.mxu0  ;;  %v1252_v6 = vadd.f32 %v3708_v15, %v1076_v7  ;;  %v1688_v2 = vadd.f32 %v2814_v0, %v1427_v44  ;;  %v1255_v17 = vadd.f32 %v3712_v51, %v1079_v43  ;;  %v1083_v25 = vadd.f32 %v3726_v11, %v3683_v53 }
 0x147   : > { %v1425_v54 = vadd.f32 %v1364_v16, %v1249_v32  ;;  %v1430_v38 = vadd.f32 %v2793_v28, %v1254_v41  ;;  %v1253_v52 = vadd.f32 %v3716_v50, %v1077_v13  ;;  %v1258_v15 = vadd.f32 %v3720_v33, %v1082_v30  ;;  %v3934_v32 = vld [vmem:[#allocation11_spill] sm:$0xff] }
 0x148   : > { %v3791_v45 = vpop.f32.mrf.mxu1  ;;  %v3793_v57 = vpop.f32.mrf.mxu0  ;;  %v1256_v0 = vadd.f32 %v3724_v46, %v1080_v9  ;;  %v1428_v51 = vadd.f32 %v3752_v12, %v1252_v6  ;;  %v1431_v16 = vadd.f32 %v2794_v14, %v1255_v17  ;;  %v1259_v28 = vadd.f32 %v3728_v47, %v1083_v25 }
 0x149   : > { %v1686_v20 = vadd.f32 %v1625_v55, %v1425_v54  ;;  %v1257_v50 = vadd.f32 %v3732_v35, %v1081_v29  ;;  %v1691_v55 = vadd.f32 %v3750_v31, %v1430_v38  ;;  %v1429_v27 = vadd.f32 %v3758_v59, %v1253_v52  ;;  %v3932_v31 = vld [vmem:[#allocation6_spill] sm:$0xff]  ;;  %v3937_v54 = vld [vmem:[#allocation15_spill] sm:$0xff] }
 0x14a   : > { %v3798_v26 = vpop.f32.mrf.mxu1  ;;  %v3800_v37 = vpop.f32.mrf.mxu0  ;;  %v1086_v12 = vadd.f32 %v3734_v21, %v3687_v40  ;;  %v1084_v47 = vadd.f32 %v3738_v39, %v3689_v48  ;;  %v1087_v1 = vadd.f32 %v3932_v31, %v3931_v42  ;;  %v3933_v59 = vld [vmem:[#allocation10_spill] sm:$0xff]  ;;  %v1692_v7 = vadd.f32 %v3934_v32, %v1431_v16  ;;  %v3936_v39 = vld [vmem:[#allocation13_spill] sm:$0xff] }
 0x14b   : > { %v1689_v58 = vadd.f32 %v3933_v59, %v1428_v51  ;;  %v1432_v41 = vadd.f32 %v3937_v54, %v1256_v0  ;;  %v3939_v0 = vld [vmem:[#allocation5_spill] sm:$0xff]  ;;  %v3940_v16 = vld [vmem:[#allocation14_spill] sm:$0xff]  ;;  %v3945_v59 = vld [vmem:[#allocation3_spill] sm:$0xff] }
 0x14c   : > { %v2837_v8 = vpop.f32.mrf.mxu1  ;;  %v2861_v4 = vpop.f32.mrf.mxu0  ;;  %v1262_v51 = vadd.f32 %v3939_v0, %v1086_v12 }
 0x14d   : > { %v1847_v5 = vadd.f32 %v2837_v8, %v1687_v60  ;;  %v3935_v60 = vld [vmem:[#allocation12_spill] sm:$0xff] }
 0x14e   : > { %v1782_v61 = vpop.f32.mrf.mxu1  ;;  %v1942_v49 = vpop.f32.mrf.mxu0  ;;  %v1690_v48 = vadd.f32 %v3935_v60, %v1429_v27 }
 0x14f   : > { %v1845_v3 = vadd.f32 %v1782_v61, %v1685_v19  ;;  %v2007_v11 = vadd.f32 %v2861_v4, %v1847_v5  ;;  %v1434_v19 = vadd.f32 %v3936_v39, %v1258_v15  ;;  %v3948_v39 = vld [vmem:[#allocation20_spill] sm:$0xff] }
 0x150   : > { %v2838_v18 = vpop.f32.mrf.mxu1  ;;  %v2862_v22 = vpop.f32.mrf.mxu0 }
 0x151   : > { %v1848_v62 = vadd.f32 %v2838_v18, %v1688_v2  ;;  %v2005_v36 = vadd.f32 %v1942_v49, %v1845_v3  ;;  %v2124_v49 = vmul.f32 %v2007_v11, %v2007_v11  ;;  %v3938_v3 = vld [vmem:[#allocation17_spill] sm:$0xff] }
 0x152   : > { %v1785_v34 = vpop.f32.mrf.mxu1  ;;  %v1945_v53 = vpop.f32.mrf.mxu0  ;;  %v1435_v17 = vadd.f32 %v3938_v3, %v1259_v28 }
 0x153   : > { %v2008_v10 = vadd.f32 %v2862_v22, %v1848_v62  ;;  %v1846_v63 = vadd.f32 %v1785_v34, %v1686_v20  ;;  %v2122_v4 = vmul.f32 %v2005_v36, %v2005_v36  ;;  %v1695_v34 = vadd.f32 %v3940_v16, %v1434_v19 }
 0x154   : > { %v2841_v33 = vpop.f32.mrf.mxu1  ;;  %v2865_v46 = vpop.f32.mrf.mxu0 }
 0x155   : > { %v2512_v14 = vpack.c.bf16 %v2008_v10, %v2007_v11  ;;  %v2006_v35 = vadd.f32 %v1945_v53, %v1846_v63  ;;  %v1851_v44 = vadd.f32 %v2841_v33, %v1691_v55  ;;  %v2125_v25 = vmul.f32 %v2008_v10, %v2008_v10  ;;  %v3941_v53 = vld [vmem:[#allocation16_spill] sm:$0xff] }
 0x156   : > { %v1798_v43 = vpop.f32.mrf.mxu1  ;;  %v1958_v8 = vpop.f32.mrf.mxu0 }
 0x157   : > { %2544 = vst [vmem:[%s3832_s19 + $0x8] sm:$0xff] %v2512_v14   ;;  %v2507_v13 = vpack.c.bf16 %v2006_v35, %v2005_v36  ;;  %v2101_v40 = vadd.f32 %v2006_v35, %v2005_v36  ;;  %v2123_v21 = vmul.f32 %v2006_v35, %v2006_v35  ;;  %v1849_v30 = vadd.f32 %v1798_v43, %v1689_v58  ;;  %v3943_v35 = vld [vmem:[#allocation4_spill] sm:$0xff]  ;;  %v3947_v43 = vld [vmem:[#allocation18_spill] sm:$0xff] }
 0x158   : > { %v2842_v9 = vpop.f32.mrf.mxu1  ;;  %v2866_v61 = vpop.f32.mrf.mxu0  ;;  %v2011_v29 = vadd.f32 %v2865_v46, %v1851_v44  ;;  %v1693_v36 = vadd.f32 %v3941_v53, %v1432_v41  ;;  %v1260_v42 = vadd.f32 %v3943_v35, %v1084_v47  ;;  %v3946_v58 = vld [vmem:[#allocation8_spill] sm:$0xff] }
 0x159   : > { %2508 = vst [vmem:[%s3832_s19] sm:$0xff] %v2507_v13   ;;  %v2102_v6 = vadd.f32 %v2101_v40, %v2007_v11  ;;  %v2138_v2 = vadd.f32 %v2123_v21, %v2122_v4  ;;  %v1852_v5 = vadd.f32 %v2842_v9, %v1692_v7  ;;  %v2009_v38 = vadd.f32 %v1958_v8, %v1849_v30  ;;  %v3942_v11 = vld [vmem:[#allocation19_spill] sm:$0xff] }
 0x15a   : > { %v1801_v18 = vpop.f32.mrf.mxu1  ;;  %v1961_v22 = vpop.f32.mrf.mxu0  ;;  %v1433_v63 = vadd.f32 %v3942_v11, %v1257_v50  ;;  %v1085_v12 = vadd.f32 %v3946_v58, %v3945_v59  ;;  %v1696_v8 = vadd.f32 %v3947_v43, %v1435_v17  ;;  %v1438_v40 = vadd.f32 %v3780_v56, %v1262_v51  ;;  %v3949_v56 = vld [vmem:[#allocation9_spill] sm:$0xff] }
 0x15b   : > { %v2139_v52 = vadd.f32 %v2138_v2, %v2124_v49  ;;  %v2103_v20 = vadd.f32 %v2102_v6, %v2008_v10  ;;  %v2012_v62 = vadd.f32 %v2866_v61, %v1852_v5  ;;  %v1850_v15 = vadd.f32 %v1801_v18, %v1690_v48  ;;  %v3944_v10 = vld [vmem:[#allocation7_spill] sm:$0xff]  ;;  %v3950_v18 = vld [vmem:[#allocation21_spill] sm:$0xff] }
 0x15c   : > { %v2845_v55 = vpop.f32.mrf.mxu1  ;;  %v2869_v28 = vpop.f32.mrf.mxu0  ;;  %v2126_v33 = vmul.f32 %v2009_v38, %v2009_v38  ;;  %v1263_v31 = vadd.f32 %v3944_v10, %v1087_v1  ;;  %v1694_v19 = vadd.f32 %v3948_v39, %v1433_v63  ;;  %v1436_v54 = vadd.f32 %v3785_v23, %v1260_v42 }
 0x15d   : > { %v2104_v27 = vadd.f32 %v2103_v20, %v2009_v38  ;;  %v2140_v46 = vadd.f32 %v2139_v52, %v2125_v25  ;;  %v2522_v14 = vpack.c.bf16 %v2012_v62, %v2011_v29  ;;  %v2010_v32 = vadd.f32 %v1961_v22, %v1850_v15 }
 0x15e   : > { %v1814_v7 = vpop.f32.mrf.mxu1  ;;  %v1974_v44 = vpop.f32.mrf.mxu0  ;;  %v1855_v4 = vadd.f32 %v2845_v55, %v1695_v34  ;;  %v1439_v41 = vadd.f32 %v3791_v45, %v1263_v31  ;;  %v2128_v9 = vmul.f32 %v2011_v29, %v2011_v29  ;;  %v1261_v3 = vadd.f32 %v3949_v56, %v1085_v12 }
 0x15f   : > { %v2141_v50 = vadd.f32 %v2140_v46, %v2126_v33  ;;  %2546 = vst [vmem:[%s3832_s19 + $0x18] sm:$0xff] %v2522_v14   ;;  %v1853_v13 = vadd.f32 %v1814_v7, %v1693_v36  ;;  %v2517_v21 = vpack.c.bf16 %v2010_v32, %v2009_v38  ;;  %v2105_v60 = vadd.f32 %v2104_v27, %v2010_v32 }
 0x160   : > { %v2127_v47 = vmul.f32 %v2010_v32, %v2010_v32  ;;  %v2846_v48 = vpop.f32.mrf.mxu1  ;;  %v2870_v1 = vpop.f32.mrf.mxu0  ;;  %v2015_v17 = vadd.f32 %v2869_v28, %v1855_v4  ;;  %v1699_v22 = vadd.f32 %v3950_v18, %v1438_v40  ;;  %v2129_v52 = vmul.f32 %v2012_v62, %v2012_v62 }
 0x161   : > { %v1856_v30 = vadd.f32 %v2846_v48, %v1696_v8  ;;  %2545 = vst [vmem:[%s3832_s19 + $0x10] sm:$0xff] %v2517_v21   ;;  %v2106_v61 = vadd.f32 %v2105_v60, %v2011_v29  ;;  %v2013_v6 = vadd.f32 %v1974_v44, %v1853_v13  ;;  %v1697_v0 = vadd.f32 %v3787_v24, %v1436_v54 }
 0x162   : > { %v2142_v49 = vadd.f32 %v2141_v50, %v2127_v47  ;;  %v1817_v2 = vpop.f32.mrf.mxu1  ;;  %v1977_v5 = vpop.f32.mrf.mxu0  ;;  %v1437_v29 = vadd.f32 %v3798_v26, %v1261_v3  ;;  %v1700_v34 = vadd.f32 %v3793_v57, %v1439_v41  ;;  %v2132_v57 = vmul.f32 %v2015_v17, %v2015_v17 }
 0x163   : > { %v2016_v25 = vadd.f32 %v2870_v1, %v1856_v30  ;;  %v1854_v38 = vadd.f32 %v1817_v2, %v1694_v19  ;;  %v2107_v20 = vadd.f32 %v2106_v61, %v2012_v62  ;;  %v2130_v36 = vmul.f32 %v2013_v6, %v2013_v6 }
 0x164   : > { %v2143_v23 = vadd.f32 %v2142_v49, %v2128_v9  ;;  %v2849_v45 = vpop.f32.mrf.mxu1  ;;  %v2873_v15 = vpop.f32.mrf.mxu0  ;;  %v1698_v26 = vadd.f32 %v3800_v37, %v1437_v29 }
 0x165   : > { %v2532_v51 = vpack.c.bf16 %v2016_v25, %v2015_v17  ;;  %v2014_v16 = vadd.f32 %v1977_v5, %v1854_v38  ;;  %v2108_v53 = vadd.f32 %v2107_v20, %v2013_v6  ;;  %v1859_v62 = vadd.f32 %v2849_v45, %v1699_v22 }
 0x166   : > { %v2144_v11 = vadd.f32 %v2143_v23, %v2129_v52  ;;  %v1830_v63 = vpop.f32.mrf.mxu1  ;;  %v1990_v55 = vpop.f32.mrf.mxu0  ;;  %v2133_v44 = vmul.f32 %v2016_v25, %v2016_v25 }
 0x167   : > { %2548 = vst [vmem:[%s3832_s19 + $0x28] sm:$0xff] %v2532_v51   ;;  %v2527_v28 = vpack.c.bf16 %v2014_v16, %v2013_v6  ;;  %v2131_v27 = vmul.f32 %v2014_v16, %v2014_v16  ;;  %v1857_v33 = vadd.f32 %v1830_v63, %v1697_v0  ;;  %v2109_v14 = vadd.f32 %v2108_v53, %v2014_v16 }
 0x168   : > { %v2145_v46 = vadd.f32 %v2144_v11, %v2130_v36  ;;  %v2850_v24 = vpop.f32.mrf.mxu1  ;;  %v2874_v35 = vpop.f32.mrf.mxu0  ;;  %v2019_v12 = vadd.f32 %v2873_v15, %v1859_v62 }
 0x169   : > { %2547 = vst [vmem:[%s3832_s19 + $0x20] sm:$0xff] %v2527_v28   ;;  %v1860_v42 = vadd.f32 %v2850_v24, %v1700_v34  ;;  %v2110_v10 = vadd.f32 %v2109_v14, %v2015_v17  ;;  %v2017_v59 = vadd.f32 %v1990_v55, %v1857_v33 }
 0x16a   : > { %v2146_v31 = vadd.f32 %v2145_v46, %v2131_v27  ;;  %v1833_v58 = vpop.f32.mrf.mxu1  ;;  %v1993_v50 = vpop.f32.mrf.mxu0  ;;  %v2136_v39 = vmul.f32 %v2019_v12, %v2019_v12 }
 0x16b   : > { %v2020_v32 = vadd.f32 %v2874_v35, %v1860_v42  ;;  %v1858_v7 = vadd.f32 %v1833_v58, %v1698_v26  ;;  %v2111_v8 = vadd.f32 %v2110_v10, %v2016_v25  ;;  %v2134_v37 = vmul.f32 %v2017_v59, %v2017_v59 }
 0x16c   : > { %v2147_v43 = vadd.f32 %v2146_v31, %v2132_v57 }
 0x16d   : > { %v2542_v4 = vpack.c.bf16 %v2020_v32, %v2019_v12  ;;  %v2018_v13 = vadd.f32 %v1993_v50, %v1858_v7  ;;  %v2112_v40 = vadd.f32 %v2111_v8, %v2017_v59  ;;  %v2137_v41 = vmul.f32 %v2020_v32, %v2020_v32 }
 0x16e   : > { %v2148_v21 = vadd.f32 %v2147_v43, %v2133_v44 }
 0x16f   : > { %2550 = vst [vmem:[%s3832_s19 + $0x38] sm:$0xff] %v2542_v4   ;;  %v2537_v60 = vpack.c.bf16 %v2018_v13, %v2017_v59  ;;  %v2135_v47 = vmul.f32 %v2018_v13, %v2018_v13  ;;  %v2113_v1 = vadd.f32 %v2112_v40, %v2018_v13 }
 0x170   : > { %v2149_v48 = vadd.f32 %v2148_v21, %v2134_v37 }
 0x171   : > { %2549 = vst [vmem:[%s3832_s19 + $0x30] sm:$0xff] %v2537_v60   ;;  %v2114_v19 = vadd.f32 %v2113_v1, %v2019_v12 }
 0x172   : > { %v2150_v54 = vadd.f32 %v2149_v48, %v2135_v47 }
 0x173   : > { %v2115_v30 = vadd.f32 %v2114_v19, %v2020_v32 }
 0x174   : > { %v2151_v9 = vadd.f32 %v2150_v54, %v2136_v39 }
 0x175   : > { %v2116_v61 = vrot.slane %v2115_v30, 4 }
 0x176   : > { %v2152_v49 = vadd.f32 %v2151_v9, %v2137_v41 }
 0x177   : > { %v2117_v6 = vadd.f32 %v2116_v61, %v2115_v30 }
 0x178   : > { %v2153_v2 = vrot.slane %v2152_v49, 4 }
 0x179   : > { %v2118_v5 = vrot.slane %v2117_v6, 2 }
 0x17a   : > { %v2154_v56 = vadd.f32 %v2153_v2, %v2152_v49 }
 0x17b   : > { %v2119_v3 = vadd.f32 %v2118_v5, %v2117_v6 }
 0x17c   : > { %v2155_v17 = vrot.slane %v2154_v56, 2 }
 0x17d   : > { %v2120_v25 = vrot.slane %v2119_v3, 1 }
 0x17e   : > { %v2156_v38 = vadd.f32 %v2155_v17, %v2154_v56 }
 0x17f   : > { %v2121_v22 = vadd.f32 %v2120_v25, %v2119_v3 }
 0x180   : > { %v2157_v18 = vrot.slane %v2156_v38, 1 }
 0x182   : > { %v2158_v52 = vadd.f32 %v2157_v18, %v2156_v38 }
 0x184   : > { %v2160_v23 = vsel %vm2159_vm7, %v2121_v22, %v2158_v52 }
 0x185   : > { %2161 = vst [vmem:[%s181_s24] sm:$0x3] %v2160_v23 }
 0x186 PF: > { %s14_s12 = sadd.s32 1, %s2944_s12  }
 0x187   : > { %p11_p4 = scmp.ge.s32.totalorder %s14_s12, 6  }
 0x189   :  { %13 = sbr.rel (!%p11_p4) target bundleno = 1 (0x1), region = 78 }

</bundles_post_ra>
